<compile_context>
chip_gen: v5e
topology: v5e:2x2
jax: 0.10.0
libtpu: 0.0.40
codegen_flags: <defaults>
</compile_context>

<pallas_src>
import math

import jax
import jax.numpy as jnp
from jax.experimental import pallas as pl
from jax.experimental.pallas import tpu as pltpu


# ----------------------------- kernel helpers -----------------------------

def _layer_norm(v, w, b, eps=1e-5):
    mu = jnp.mean(v, axis=-1, keepdims=True)
    var = jnp.mean((v - mu) ** 2, axis=-1, keepdims=True)
    return (v - mu) * jax.lax.rsqrt(var + eps) * w + b


def _gelu_exact(v):
    # PyTorch nn.GELU() default = exact erf-based GELU.
    return 0.5 * v * (1.0 + jax.lax.erf(v * (1.0 / math.sqrt(2.0))))


# ------------------------------- the kernel -------------------------------

def attention_block_kernel(x_ref, ln1w_ref, ln1b_ref,
                           wqkv_ref, bqkv_ref,
                           wo_ref, bo_ref,
                           ln2w_ref, ln2b_ref,
                           w1_ref, b1_ref, w2_ref, b2_ref,
                           o_ref):
    f32, bf16 = jnp.float32, jnp.bfloat16
    Bb, S, E = x_ref.shape
    H, Dh, _ = wo_ref.shape
    N = Bb * S                                   # folded (batch, seq) rows

    x = x_ref[...].astype(f32).reshape(N, E)     # (N, E)

    # --- LayerNorm 1 (f32 VALU) ---
    inp = _layer_norm(x, ln1w_ref[...], ln1b_ref[...])

    # --- fused, lane-dense QKV projection: ONE (N,E)@(E,3E) MXU matmul.
    #     The 1/sqrt(Dh) attention scale is already folded into the Q columns
    #     of wqkv / bqkv (one-time weight transform in the wrapper). ---
    qkv = jnp.dot(inp.astype(bf16), wqkv_ref[...],
                  preferred_element_type=f32) + bqkv_ref[...]       # (N, 3E) f32

    # --- head-major split: (N, 3E) -> (H*Bb, S, Dh), group = (head, sample).
    #     Static lane slices + leading-axis concat; single bf16 cast per tensor
    #     on the path into the attention matmuls. ---
    def split_heads(col0):
        chunks = [qkv[:, col0 + h * Dh: col0 + (h + 1) * Dh].reshape(Bb, S, Dh)
                  for h in range(H)]
        return jnp.concatenate(chunks, axis=0).astype(bf16)         # (H*Bb, S, Dh)

    q = split_heads(0)
    k = split_heads(E)
    v = split_heads(2 * E)

    # --- batched multi-head attention over (head, sample) groups ---
    # TODO(synk): for long sequences (S >> 256) switch to a query-tiled
    # flash-style online softmax instead of the full (H*Bb, S, S) score tensor.
    s = jnp.einsum("gqd,gkd->gqk", q, k,
                   preferred_element_type=f32)                      # (G, S, S) f32
    s = s - jnp.max(s, axis=-1, keepdims=True)                      # one max pass
    p = jnp.exp(s)
    inv = pl.reciprocal(jnp.sum(p, axis=-1, keepdims=True), approx=True)
    p = (p * inv).astype(bf16)                                      # EUP reciprocal
    ctx = jnp.einsum("gqk,gkd->gqd", p, v,
                     preferred_element_type=f32)                    # (G, S, Dh) f32

    # --- output projection with the head merge folded in: accumulate
    #     sum_h ctx_h @ wo[h] in f32 (no lane-dim concat / relayout). ---
    wo = wo_ref[...]                                                # (H, Dh, E) bf16
    attn = bo_ref[...]                                              # (1, E) f32
    for h in range(H):
        ctx_h = ctx[h * Bb:(h + 1) * Bb].reshape(N, Dh).astype(bf16)
        attn = attn + jnp.dot(ctx_h, wo[h], preferred_element_type=f32)

    x1 = x + attn                                                   # residual 1

    # --- LayerNorm 2 + MLP (Linear -> GELU -> Linear) ---
    n2 = _layer_norm(x1, ln2w_ref[...], ln2b_ref[...])
    h1 = jnp.dot(n2.astype(bf16), w1_ref[...],
                 preferred_element_type=f32) + b1_ref[...]
    h1 = _gelu_exact(h1)
    mlp = jnp.dot(h1.astype(bf16), w2_ref[...],
                  preferred_element_type=f32) + b2_ref[...]

    # TODO(synk): for toy E < 128 this store is lane-masked; real ViT widths
    # (E >= 128, multiples of 128) keep the store lane-dense.
    o_ref[...] = (x1 + mlp).reshape(Bb, S, E).astype(o_ref.dtype)   # residual 2


# ------------------------------- wrapper -----------------------------------

def attention_block(x, params, *, num_heads, batch_block=None):
    B, S, E = x.shape
    H = num_heads
    assert E % H == 0, "embed_dim must be divisible by num_heads"
    Dh = E // H
    hidden = params["w1"].shape[0]
    scale = 1.0 / math.sqrt(Dh)
    f32, bf16 = jnp.float32, jnp.bfloat16

    # --- batch folding: several samples per grid step (amortizes ~0.35us/step
    #     pipeline overhead, enlarges the MXU M dim) while keeping the grid
    #     length >= 2 so both v7x TensorCores get work. ---
    if batch_block is None:
        batch_block = 1
        for bb in range(1, min(B, 4) + 1):
            if B % bb == 0 and (B // bb >= 2 or B == 1):
                batch_block = bb
    Bb = batch_block
    assert B % Bb == 0
    grid_len = B // Bb
    # TODO(synk): if grid_len == 1 (B == 1), add a second parallel grid axis
    # (e.g. over query tiles) so the second v7x TensorCore is not idle.

    w_in = params["in_proj_weight"]                   # (3E, E), PyTorch (out, in)
    b_in = params["in_proj_bias"]                     # (3E,)

    # Fused lane-dense QKV weight (E, 3E); attention scale folded into Q part.
    wqkv = jnp.concatenate([w_in[:E] * scale, w_in[E:]], axis=0).T.astype(bf16)
    bqkv = jnp.concatenate([b_in[:E] * scale, b_in[E:]]).reshape(1, 3 * E).astype(f32)

    # Head-major output projection weight (H, Dh, E) so the head merge folds
    # into the projection accumulation (no lane concat in the kernel).
    wo = params["out_proj_weight"].T.reshape(H, Dh, E).astype(bf16)
    bo = params["out_proj_bias"].reshape(1, E).astype(f32)

    ln1w = params["ln1_w"].reshape(1, E).astype(f32)
    ln1b = params["ln1_b"].reshape(1, E).astype(f32)
    ln2w = params["ln2_w"].reshape(1, E).astype(f32)
    ln2b = params["ln2_b"].reshape(1, E).astype(f32)

    w1 = params["w1"].T.astype(bf16)                  # (E, hidden)
    b1 = params["b1"].reshape(1, hidden).astype(f32)
    w2 = params["w2"].T.astype(bf16)                  # (hidden, E)
    b2 = params["b2"].reshape(1, E).astype(f32)

    consts = (ln1w, ln1b, wqkv, bqkv, wo, bo, ln2w, ln2b, w1, b1, w2, b2)
    const_shapes = tuple(a.shape for a in consts)

    def vmem_budget(weight_bufs):
        # Honest budget: constants x buffer-count, double-buffered x/out blocks,
        # f32 in-kernel intermediates, plus fixed headroom; capped for v7x 64 MiB.
        const_bytes = sum(int(a.size) * a.dtype.itemsize for a in consts)
        io_bytes = 2 * 2 * Bb * S * E * x.dtype.itemsize
        N, G = Bb * S, Bb * H
        interm = 4 * (N * 3 * E          # qkv
                      + 2 * G * S * S    # scores + probs
                      + G * S * Dh       # context
                      + N * hidden       # MLP hidden
                      + 4 * N * E)       # x, ln, residual, mlp
        budget = weight_bufs * const_bytes + io_bytes + interm + (4 << 20)
        return int(min(max(budget, 16 << 20), 56 << 20))

    def build(weight_bufs):
        if weight_bufs == 1:
            def const_spec(shape):
                # Grid-invariant operands: one VMEM buffer is enough; default
                # double-buffering only wastes VMEM (matters on v7x).
                return pl.BlockSpec(shape, lambda *_: (0,) * len(shape),
                                    pipeline_mode=pl.Buffered(1))
        else:
            def const_spec(shape):
                return pl.BlockSpec(shape, lambda *_: (0,) * len(shape))

        grid_spec = pltpu.PrefetchScalarGridSpec(
            num_scalar_prefetch=0,
            grid=(grid_len,),
            in_specs=[pl.BlockSpec((Bb, S, E), lambda i: (i, 0, 0))]
                     + [const_spec(s) for s in const_shapes],
            out_specs=pl.BlockSpec((Bb, S, E), lambda i: (i, 0, 0)),
        )
        return pl.pallas_call(
            attention_block_kernel,
            out_shape=jax.ShapeDtypeStruct((B, S, E), x.dtype),
            grid_spec=grid_spec,
            compiler_params=pltpu.CompilerParams(
                dimension_semantics=("parallel",),
                vmem_limit_bytes=vmem_budget(weight_bufs)),
        )

    args = (x,) + consts
    try:
        return build(1)(*args)
    except (TypeError, ValueError, NotImplementedError, RuntimeError,
            pltpu.LoweringException):
        # This jax/Mosaic version rejected pipeline_mode=pl.Buffered(1) on the
        # grid-invariant weights; fall back to default double-buffering with a
        # correspondingly larger (still capped) VMEM budget.
        return build(2)(*args)


# --------------------------- pure-JAX reference -----------------------------

def attention_block_ref(x, params, *, num_heads):
    B, S, E = x.shape
    H, Dh = num_heads, E // num_heads

    def ln(v, w, b, eps=1e-5):
        mu = v.mean(-1, keepdims=True)
        var = ((v - mu) ** 2).mean(-1, keepdims=True)
        return (v - mu) / jnp.sqrt(var + eps) * w + b

    inp = ln(x, params["ln1_w"], params["ln1_b"])
    qkv = inp @ params["in_proj_weight"].T + params["in_proj_bias"]
    q, k, v = jnp.split(qkv, 3, axis=-1)
    q = q.reshape(B, S, H, Dh).transpose(0, 2, 1, 3)
    k = k.reshape(B, S, H, Dh).transpose(0, 2, 1, 3)
    v = v.reshape(B, S, H, Dh).transpose(0, 2, 1, 3)
    s = jnp.einsum("bhqd,bhkd->bhqk", q, k) / math.sqrt(Dh)
    p = jax.nn.softmax(s, axis=-1)
    o = jnp.einsum("bhqk,bhkd->bhqd", p, v).transpose(0, 2, 1, 3).reshape(B, S, E)
    attn_out = o @ params["out_proj_weight"].T + params["out_proj_bias"]
    x1 = x + attn_out
    n2 = ln(x1, params["ln2_w"], params["ln2_b"])
    h1 = n2 @ params["w1"].T + params["b1"]
    h1 = 0.5 * h1 * (1.0 + jax.lax.erf(h1 / math.sqrt(2.0)))
    mlp = h1 @ params["w2"].T + params["b2"]
    return x1 + mlp


# --------------------------------- main -------------------------------------

if __name__ == "__main__":
    B, S, E, H = 4, 8, 32, 4        # batch, seq, embed_dim, num_heads
    HIDDEN = 64                     # hidden_dim (2x embed_dim)

    key = jax.random.PRNGKey(0)
    ks = jax.random.split(key, 9)

    params = {
        # LayerNorms: standard init (weight=1, bias=0)
        "ln1_w": jnp.ones((E,), jnp.float32),
        "ln1_b": jnp.zeros((E,), jnp.float32),
        "ln2_w": jnp.ones((E,), jnp.float32),
        "ln2_b": jnp.zeros((E,), jnp.float32),
        # MultiheadAttention: in_proj (3E, E), out_proj (E, E) — PyTorch (out, in)
        "in_proj_weight": 0.05 * jax.random.normal(ks[0], (3 * E, E), jnp.float32),
        "in_proj_bias": 0.05 * jax.random.normal(ks[1], (3 * E,), jnp.float32),
        "out_proj_weight": 0.05 * jax.random.normal(ks[2], (E, E), jnp.float32),
        "out_proj_bias": 0.05 * jax.random.normal(ks[3], (E,), jnp.float32),
        # MLP: Linear(E, hidden), Linear(hidden, E) — PyTorch (out, in) layout
        "w1": 0.05 * jax.random.normal(ks[4], (HIDDEN, E), jnp.float32),
        "b1": 0.05 * jax.random.normal(ks[5], (HIDDEN,), jnp.float32),
        "w2": 0.05 * jax.random.normal(ks[6], (E, HIDDEN), jnp.float32),
        "b2": 0.05 * jax.random.normal(ks[7], (E,), jnp.float32),
    }

    x = jax.random.normal(ks[8], (B, S, E), jnp.float32)

    out = attention_block(x, params, num_heads=H)
    out = jax.block_until_ready(out)

    ref = attention_block_ref(x, params, num_heads=H)
    assert out.shape == (B, S, E)
    # bf16 MXU inputs + approximate reciprocal -> loosened tolerance vs f32 ref.
    assert jnp.allclose(out, ref, rtol=2e-2, atol=2e-2), \
        f"max err {jnp.max(jnp.abs(out - ref))}"

    print("KERNEL_OK")
</pallas_src>

<mosaic_0001>
module attributes {stable_mosaic.version = 11 : i64} {
  func.func @attention_block_kernel(%arg0: i32, %arg1: memref<2x8x32xf32, #tpu.memory_space<vmem>>, %arg2: memref<1x32xf32, #tpu.memory_space<vmem>>, %arg3: memref<1x32xf32, #tpu.memory_space<vmem>>, %arg4: memref<32x96xbf16, #tpu.memory_space<vmem>>, %arg5: memref<1x96xf32, #tpu.memory_space<vmem>>, %arg6: memref<4x8x32xbf16, #tpu.memory_space<vmem>>, %arg7: memref<1x32xf32, #tpu.memory_space<vmem>>, %arg8: memref<1x32xf32, #tpu.memory_space<vmem>>, %arg9: memref<1x32xf32, #tpu.memory_space<vmem>>, %arg10: memref<32x64xbf16, #tpu.memory_space<vmem>>, %arg11: memref<1x64xf32, #tpu.memory_space<vmem>>, %arg12: memref<64x32xbf16, #tpu.memory_space<vmem>>, %arg13: memref<1x32xf32, #tpu.memory_space<vmem>>, %arg14: memref<2x8x32xf32, #tpu.memory_space<vmem>>) attributes {dimension_semantics = [#tpu.dimension_semantics<parallel>], iteration_bounds = array<i64: 2>, scalar_prefetch = 0 : i64, scratch_operands = 0 : i64, tpu.core_type = #tpu.core_type<tc>, window_params = [{transform_indices = @transform_0, window_bounds = array<i64: 2, 8, 32>}, {pipeline_mode = #tpu.pipeline_mode<synchronous>, transform_indices = @transform_1, window_bounds = array<i64: 1, 32>}, {pipeline_mode = #tpu.pipeline_mode<synchronous>, transform_indices = @transform_2, window_bounds = array<i64: 1, 32>}, {pipeline_mode = #tpu.pipeline_mode<synchronous>, transform_indices = @transform_3, window_bounds = array<i64: 32, 96>}, {pipeline_mode = #tpu.pipeline_mode<synchronous>, transform_indices = @transform_4, window_bounds = array<i64: 1, 96>}, {pipeline_mode = #tpu.pipeline_mode<synchronous>, transform_indices = @transform_5, window_bounds = array<i64: 4, 8, 32>}, {pipeline_mode = #tpu.pipeline_mode<synchronous>, transform_indices = @transform_6, window_bounds = array<i64: 1, 32>}, {pipeline_mode = #tpu.pipeline_mode<synchronous>, transform_indices = @transform_7, window_bounds = array<i64: 1, 32>}, {pipeline_mode = #tpu.pipeline_mode<synchronous>, transform_indices = @transform_8, window_bounds = array<i64: 1, 32>}, {pipeline_mode = #tpu.pipeline_mode<synchronous>, transform_indices = @transform_9, window_bounds = array<i64: 32, 64>}, {pipeline_mode = #tpu.pipeline_mode<synchronous>, transform_indices = @transform_10, window_bounds = array<i64: 1, 64>}, {pipeline_mode = #tpu.pipeline_mode<synchronous>, transform_indices = @transform_11, window_bounds = array<i64: 64, 32>}, {pipeline_mode = #tpu.pipeline_mode<synchronous>, transform_indices = @transform_12, window_bounds = array<i64: 1, 32>}, {transform_indices = @transform_13, window_bounds = array<i64: 2, 8, 32>}]} {
    %c0 = arith.constant 0 : index
    %c0_0 = arith.constant 0 : index
    %c0_1 = arith.constant 0 : index
    %0 = vector.load %arg1[%c0, %c0_0, %c0_1] : memref<2x8x32xf32, #tpu.memory_space<vmem>>, vector<2x8x32xf32>
    %1 = vector.shape_cast %0 : vector<2x8x32xf32> to vector<16x32xf32>
    %c0_2 = arith.constant 0 : index
    %c0_3 = arith.constant 0 : index
    %2 = vector.load %arg2[%c0_2, %c0_3] : memref<1x32xf32, #tpu.memory_space<vmem>>, vector<1x32xf32>
    %c0_4 = arith.constant 0 : index
    %c0_5 = arith.constant 0 : index
    %3 = vector.load %arg3[%c0_4, %c0_5] : memref<1x32xf32, #tpu.memory_space<vmem>>, vector<1x32xf32>
    %cst = arith.constant dense<0.000000e+00> : vector<16xf32>
    %4 = vector.multi_reduction <add>, %1, %cst [1] : vector<16x32xf32> to vector<16xf32>
    %5 = vector.shape_cast %4 : vector<16xf32> to vector<16x1xf32>
    %cst_6 = arith.constant 3.200000e+01 : f32
    %6 = vector.broadcast %cst_6 : f32 to vector<16x1xf32>
    %7 = arith.divf %5, %6 : vector<16x1xf32>
    %8 = vector.broadcast %7 : vector<16x1xf32> to vector<16x32xf32>
    %9 = arith.subf %1, %8 : vector<16x32xf32>
    %10 = arith.mulf %9, %9 : vector<16x32xf32>
    %cst_7 = arith.constant dense<0.000000e+00> : vector<16xf32>
    %11 = vector.multi_reduction <add>, %10, %cst_7 [1] : vector<16x32xf32> to vector<16xf32>
    %12 = vector.shape_cast %11 : vector<16xf32> to vector<16x1xf32>
    %cst_8 = arith.constant 3.200000e+01 : f32
    %13 = vector.broadcast %cst_8 : f32 to vector<16x1xf32>
    %14 = arith.divf %12, %13 : vector<16x1xf32>
    %15 = vector.broadcast %7 : vector<16x1xf32> to vector<16x32xf32>
    %16 = arith.subf %1, %15 : vector<16x32xf32>
    %cst_9 = arith.constant 9.99999974E-6 : f32
    %17 = vector.broadcast %cst_9 : f32 to vector<16x1xf32>
    %18 = arith.addf %14, %17 : vector<16x1xf32>
    %19 = math.rsqrt %18 : vector<16x1xf32>
    %20 = vector.broadcast %19 : vector<16x1xf32> to vector<16x32xf32>
    %21 = arith.mulf %16, %20 : vector<16x32xf32>
    %22 = vector.broadcast %2 : vector<1x32xf32> to vector<16x32xf32>
    %23 = arith.mulf %21, %22 : vector<16x32xf32>
    %24 = vector.broadcast %3 : vector<1x32xf32> to vector<16x32xf32>
    %25 = arith.addf %23, %24 : vector<16x32xf32>
    %26 = arith.truncf %25 : vector<16x32xf32> to vector<16x32xbf16>
    %c0_10 = arith.constant 0 : index
    %c0_11 = arith.constant 0 : index
    %27 = vector.load %arg4[%c0_10, %c0_11] : memref<32x96xbf16, #tpu.memory_space<vmem>>, vector<32x96xbf16>
    %cst_12 = arith.constant dense<0.000000e+00> : vector<16x96xf32>
    %28 = tpu.matmul %26, %27, %cst_12 {dimension_numbers = #tpu.dot_dimension_numbers<[1], [0], [0], [1], [0, 0, 1, 1], [], []>} : vector<16x32xbf16>, vector<32x96xbf16>, vector<16x96xf32> -> vector<16x96xf32>
    %c0_13 = arith.constant 0 : index
    %c0_14 = arith.constant 0 : index
    %29 = vector.load %arg5[%c0_13, %c0_14] : memref<1x96xf32, #tpu.memory_space<vmem>>, vector<1x96xf32>
    %30 = vector.broadcast %29 : vector<1x96xf32> to vector<16x96xf32>
    %31 = arith.addf %28, %30 : vector<16x96xf32>
    %32 = vector.extract_strided_slice %31 {offsets = [0, 0], sizes = [16, 8], strides = [1, 1]} : vector<16x96xf32> to vector<16x8xf32>
    %33 = vector.shape_cast %32 : vector<16x8xf32> to vector<2x8x8xf32>
    %34 = vector.extract_strided_slice %31 {offsets = [0, 8], sizes = [16, 8], strides = [1, 1]} : vector<16x96xf32> to vector<16x8xf32>
    %35 = vector.shape_cast %34 : vector<16x8xf32> to vector<2x8x8xf32>
    %36 = vector.extract_strided_slice %31 {offsets = [0, 16], sizes = [16, 8], strides = [1, 1]} : vector<16x96xf32> to vector<16x8xf32>
    %37 = vector.shape_cast %36 : vector<16x8xf32> to vector<2x8x8xf32>
    %38 = vector.extract_strided_slice %31 {offsets = [0, 24], sizes = [16, 8], strides = [1, 1]} : vector<16x96xf32> to vector<16x8xf32>
    %39 = vector.shape_cast %38 : vector<16x8xf32> to vector<2x8x8xf32>
    %40 = tpu.concatenate %33, %35, %37, %39 in 0 : vector<2x8x8xf32>, vector<2x8x8xf32>, vector<2x8x8xf32>, vector<2x8x8xf32> -> vector<8x8x8xf32>
    %41 = arith.truncf %40 : vector<8x8x8xf32> to vector<8x8x8xbf16>
    %42 = vector.extract_strided_slice %31 {offsets = [0, 32], sizes = [16, 8], strides = [1, 1]} : vector<16x96xf32> to vector<16x8xf32>
    %43 = vector.shape_cast %42 : vector<16x8xf32> to vector<2x8x8xf32>
    %44 = vector.extract_strided_slice %31 {offsets = [0, 40], sizes = [16, 8], strides = [1, 1]} : vector<16x96xf32> to vector<16x8xf32>
    %45 = vector.shape_cast %44 : vector<16x8xf32> to vector<2x8x8xf32>
    %46 = vector.extract_strided_slice %31 {offsets = [0, 48], sizes = [16, 8], strides = [1, 1]} : vector<16x96xf32> to vector<16x8xf32>
    %47 = vector.shape_cast %46 : vector<16x8xf32> to vector<2x8x8xf32>
    %48 = vector.extract_strided_slice %31 {offsets = [0, 56], sizes = [16, 8], strides = [1, 1]} : vector<16x96xf32> to vector<16x8xf32>
    %49 = vector.shape_cast %48 : vector<16x8xf32> to vector<2x8x8xf32>
    %50 = tpu.concatenate %43, %45, %47, %49 in 0 : vector<2x8x8xf32>, vector<2x8x8xf32>, vector<2x8x8xf32>, vector<2x8x8xf32> -> vector<8x8x8xf32>
    %51 = arith.truncf %50 : vector<8x8x8xf32> to vector<8x8x8xbf16>
    %52 = vector.extract_strided_slice %31 {offsets = [0, 64], sizes = [16, 8], strides = [1, 1]} : vector<16x96xf32> to vector<16x8xf32>
    %53 = vector.shape_cast %52 : vector<16x8xf32> to vector<2x8x8xf32>
    %54 = vector.extract_strided_slice %31 {offsets = [0, 72], sizes = [16, 8], strides = [1, 1]} : vector<16x96xf32> to vector<16x8xf32>
    %55 = vector.shape_cast %54 : vector<16x8xf32> to vector<2x8x8xf32>
    %56 = vector.extract_strided_slice %31 {offsets = [0, 80], sizes = [16, 8], strides = [1, 1]} : vector<16x96xf32> to vector<16x8xf32>
    %57 = vector.shape_cast %56 : vector<16x8xf32> to vector<2x8x8xf32>
    %58 = vector.extract_strided_slice %31 {offsets = [0, 88], sizes = [16, 8], strides = [1, 1]} : vector<16x96xf32> to vector<16x8xf32>
    %59 = vector.shape_cast %58 : vector<16x8xf32> to vector<2x8x8xf32>
    %60 = tpu.concatenate %53, %55, %57, %59 in 0 : vector<2x8x8xf32>, vector<2x8x8xf32>, vector<2x8x8xf32>, vector<2x8x8xf32> -> vector<8x8x8xf32>
    %61 = arith.truncf %60 : vector<8x8x8xf32> to vector<8x8x8xbf16>
    "tpu.trace_start"() <{level = 10 : i32, message = "gqd,gkd->gqk"}> : () -> ()
    %cst_15 = arith.constant dense<0.000000e+00> : vector<8x8x8xf32>
    %62 = tpu.matmul %41, %51, %cst_15 {dimension_numbers = #tpu.dot_dimension_numbers<[2], [2], [1], [1], [0, 0, 0, 1, 1, 1], [0], [0]>} : vector<8x8x8xbf16>, vector<8x8x8xbf16>, vector<8x8x8xf32> -> vector<8x8x8xf32>
    "tpu.trace_stop"() : () -> ()
    %cst_16 = arith.constant dense<0xFF800000> : vector<8x8xf32>
    %63 = vector.multi_reduction <maximumf>, %62, %cst_16 [2] : vector<8x8x8xf32> to vector<8x8xf32>
    %64 = vector.shape_cast %63 : vector<8x8xf32> to vector<8x8x1xf32>
    %65 = vector.broadcast %64 : vector<8x8x1xf32> to vector<8x8x8xf32>
    %66 = arith.subf %62, %65 : vector<8x8x8xf32>
    %67 = math.exp %66 : vector<8x8x8xf32>
    %cst_17 = arith.constant dense<0.000000e+00> : vector<8x8xf32>
    %68 = vector.multi_reduction <add>, %67, %cst_17 [2] : vector<8x8x8xf32> to vector<8x8xf32>
    %69 = vector.shape_cast %68 : vector<8x8xf32> to vector<8x8x1xf32>
    %70 = tpu.reciprocal %69 {approx = true} : vector<8x8x1xf32> -> vector<8x8x1xf32>
    %71 = vector.broadcast %70 : vector<8x8x1xf32> to vector<8x8x8xf32>
    %72 = arith.mulf %67, %71 : vector<8x8x8xf32>
    %73 = arith.truncf %72 : vector<8x8x8xf32> to vector<8x8x8xbf16>
    "tpu.trace_start"() <{level = 10 : i32, message = "gqk,gkd->gqd"}> : () -> ()
    %cst_18 = arith.constant dense<0.000000e+00> : vector<8x8x8xf32>
    %74 = tpu.matmul %73, %61, %cst_18 {dimension_numbers = #tpu.dot_dimension_numbers<[2], [1], [1], [2], [0, 0, 0, 1, 1, 2], [0], [0]>} : vector<8x8x8xbf16>, vector<8x8x8xbf16>, vector<8x8x8xf32> -> vector<8x8x8xf32>
    "tpu.trace_stop"() : () -> ()
    %c0_19 = arith.constant 0 : index
    %c0_20 = arith.constant 0 : index
    %c0_21 = arith.constant 0 : index
    %75 = vector.load %arg6[%c0_19, %c0_20, %c0_21] : memref<4x8x32xbf16, #tpu.memory_space<vmem>>, vector<4x8x32xbf16>
    %c0_22 = arith.constant 0 : index
    %c0_23 = arith.constant 0 : index
    %76 = vector.load %arg7[%c0_22, %c0_23] : memref<1x32xf32, #tpu.memory_space<vmem>>, vector<1x32xf32>
    %77 = vector.extract_strided_slice %74 {offsets = [0, 0, 0], sizes = [2, 8, 8], strides = [1, 1, 1]} : vector<8x8x8xf32> to vector<2x8x8xf32>
    %78 = vector.shape_cast %77 : vector<2x8x8xf32> to vector<16x8xf32>
    %79 = arith.truncf %78 : vector<16x8xf32> to vector<16x8xbf16>
    %80 = vector.extract_strided_slice %75 {offsets = [0, 0, 0], sizes = [1, 8, 32], strides = [1, 1, 1]} : vector<4x8x32xbf16> to vector<1x8x32xbf16>
    %81 = vector.shape_cast %80 : vector<1x8x32xbf16> to vector<8x32xbf16>
    %cst_24 = arith.constant dense<0.000000e+00> : vector<16x32xf32>
    %82 = tpu.matmul %79, %81, %cst_24 {dimension_numbers = #tpu.dot_dimension_numbers<[1], [0], [0], [1], [0, 0, 1, 1], [], []>} : vector<16x8xbf16>, vector<8x32xbf16>, vector<16x32xf32> -> vector<16x32xf32>
    %83 = vector.broadcast %76 : vector<1x32xf32> to vector<16x32xf32>
    %84 = arith.addf %83, %82 : vector<16x32xf32>
    %85 = vector.extract_strided_slice %74 {offsets = [2, 0, 0], sizes = [2, 8, 8], strides = [1, 1, 1]} : vector<8x8x8xf32> to vector<2x8x8xf32>
    %86 = vector.shape_cast %85 : vector<2x8x8xf32> to vector<16x8xf32>
    %87 = arith.truncf %86 : vector<16x8xf32> to vector<16x8xbf16>
    %88 = vector.extract_strided_slice %75 {offsets = [1, 0, 0], sizes = [1, 8, 32], strides = [1, 1, 1]} : vector<4x8x32xbf16> to vector<1x8x32xbf16>
    %89 = vector.shape_cast %88 : vector<1x8x32xbf16> to vector<8x32xbf16>
    %cst_25 = arith.constant dense<0.000000e+00> : vector<16x32xf32>
    %90 = tpu.matmul %87, %89, %cst_25 {dimension_numbers = #tpu.dot_dimension_numbers<[1], [0], [0], [1], [0, 0, 1, 1], [], []>} : vector<16x8xbf16>, vector<8x32xbf16>, vector<16x32xf32> -> vector<16x32xf32>
    %91 = arith.addf %84, %90 : vector<16x32xf32>
    %92 = vector.extract_strided_slice %74 {offsets = [4, 0, 0], sizes = [2, 8, 8], strides = [1, 1, 1]} : vector<8x8x8xf32> to vector<2x8x8xf32>
    %93 = vector.shape_cast %92 : vector<2x8x8xf32> to vector<16x8xf32>
    %94 = arith.truncf %93 : vector<16x8xf32> to vector<16x8xbf16>
    %95 = vector.extract_strided_slice %75 {offsets = [2, 0, 0], sizes = [1, 8, 32], strides = [1, 1, 1]} : vector<4x8x32xbf16> to vector<1x8x32xbf16>
    %96 = vector.shape_cast %95 : vector<1x8x32xbf16> to vector<8x32xbf16>
    %cst_26 = arith.constant dense<0.000000e+00> : vector<16x32xf32>
    %97 = tpu.matmul %94, %96, %cst_26 {dimension_numbers = #tpu.dot_dimension_numbers<[1], [0], [0], [1], [0, 0, 1, 1], [], []>} : vector<16x8xbf16>, vector<8x32xbf16>, vector<16x32xf32> -> vector<16x32xf32>
    %98 = arith.addf %91, %97 : vector<16x32xf32>
    %99 = vector.extract_strided_slice %74 {offsets = [6, 0, 0], sizes = [2, 8, 8], strides = [1, 1, 1]} : vector<8x8x8xf32> to vector<2x8x8xf32>
    %100 = vector.shape_cast %99 : vector<2x8x8xf32> to vector<16x8xf32>
    %101 = arith.truncf %100 : vector<16x8xf32> to vector<16x8xbf16>
    %102 = vector.extract_strided_slice %75 {offsets = [3, 0, 0], sizes = [1, 8, 32], strides = [1, 1, 1]} : vector<4x8x32xbf16> to vector<1x8x32xbf16>
    %103 = vector.shape_cast %102 : vector<1x8x32xbf16> to vector<8x32xbf16>
    %cst_27 = arith.constant dense<0.000000e+00> : vector<16x32xf32>
    %104 = tpu.matmul %101, %103, %cst_27 {dimension_numbers = #tpu.dot_dimension_numbers<[1], [0], [0], [1], [0, 0, 1, 1], [], []>} : vector<16x8xbf16>, vector<8x32xbf16>, vector<16x32xf32> -> vector<16x32xf32>
    %105 = arith.addf %98, %104 : vector<16x32xf32>
    %106 = arith.addf %1, %105 : vector<16x32xf32>
    %c0_28 = arith.constant 0 : index
    %c0_29 = arith.constant 0 : index
    %107 = vector.load %arg8[%c0_28, %c0_29] : memref<1x32xf32, #tpu.memory_space<vmem>>, vector<1x32xf32>
    %c0_30 = arith.constant 0 : index
    %c0_31 = arith.constant 0 : index
    %108 = vector.load %arg9[%c0_30, %c0_31] : memref<1x32xf32, #tpu.memory_space<vmem>>, vector<1x32xf32>
    %cst_32 = arith.constant dense<0.000000e+00> : vector<16xf32>
    %109 = vector.multi_reduction <add>, %106, %cst_32 [1] : vector<16x32xf32> to vector<16xf32>
    %110 = vector.shape_cast %109 : vector<16xf32> to vector<16x1xf32>
    %cst_33 = arith.constant 3.200000e+01 : f32
    %111 = vector.broadcast %cst_33 : f32 to vector<16x1xf32>
    %112 = arith.divf %110, %111 : vector<16x1xf32>
    %113 = vector.broadcast %112 : vector<16x1xf32> to vector<16x32xf32>
    %114 = arith.subf %106, %113 : vector<16x32xf32>
    %115 = arith.mulf %114, %114 : vector<16x32xf32>
    %cst_34 = arith.constant dense<0.000000e+00> : vector<16xf32>
    %116 = vector.multi_reduction <add>, %115, %cst_34 [1] : vector<16x32xf32> to vector<16xf32>
    %117 = vector.shape_cast %116 : vector<16xf32> to vector<16x1xf32>
    %cst_35 = arith.constant 3.200000e+01 : f32
    %118 = vector.broadcast %cst_35 : f32 to vector<16x1xf32>
    %119 = arith.divf %117, %118 : vector<16x1xf32>
    %120 = vector.broadcast %112 : vector<16x1xf32> to vector<16x32xf32>
    %121 = arith.subf %106, %120 : vector<16x32xf32>
    %cst_36 = arith.constant 9.99999974E-6 : f32
    %122 = vector.broadcast %cst_36 : f32 to vector<16x1xf32>
    %123 = arith.addf %119, %122 : vector<16x1xf32>
    %124 = math.rsqrt %123 : vector<16x1xf32>
    %125 = vector.broadcast %124 : vector<16x1xf32> to vector<16x32xf32>
    %126 = arith.mulf %121, %125 : vector<16x32xf32>
    %127 = vector.broadcast %107 : vector<1x32xf32> to vector<16x32xf32>
    %128 = arith.mulf %126, %127 : vector<16x32xf32>
    %129 = vector.broadcast %108 : vector<1x32xf32> to vector<16x32xf32>
    %130 = arith.addf %128, %129 : vector<16x32xf32>
    %131 = arith.truncf %130 : vector<16x32xf32> to vector<16x32xbf16>
    %c0_37 = arith.constant 0 : index
    %c0_38 = arith.constant 0 : index
    %132 = vector.load %arg10[%c0_37, %c0_38] : memref<32x64xbf16, #tpu.memory_space<vmem>>, vector<32x64xbf16>
    %cst_39 = arith.constant dense<0.000000e+00> : vector<16x64xf32>
    %133 = tpu.matmul %131, %132, %cst_39 {dimension_numbers = #tpu.dot_dimension_numbers<[1], [0], [0], [1], [0, 0, 1, 1], [], []>} : vector<16x32xbf16>, vector<32x64xbf16>, vector<16x64xf32> -> vector<16x64xf32>
    %c0_40 = arith.constant 0 : index
    %c0_41 = arith.constant 0 : index
    %134 = vector.load %arg11[%c0_40, %c0_41] : memref<1x64xf32, #tpu.memory_space<vmem>>, vector<1x64xf32>
    %135 = vector.broadcast %134 : vector<1x64xf32> to vector<16x64xf32>
    %136 = arith.addf %133, %135 : vector<16x64xf32>
    %cst_42 = arith.constant 5.000000e-01 : f32
    %137 = vector.broadcast %cst_42 : f32 to vector<16x64xf32>
    %138 = arith.mulf %137, %136 : vector<16x64xf32>
    %cst_43 = arith.constant 0.707106769 : f32
    %139 = vector.broadcast %cst_43 : f32 to vector<16x64xf32>
    %140 = arith.mulf %136, %139 : vector<16x64xf32>
    %141 = math.erf %140 : vector<16x64xf32>
    %cst_44 = arith.constant 1.000000e+00 : f32
    %142 = vector.broadcast %cst_44 : f32 to vector<16x64xf32>
    %143 = arith.addf %142, %141 : vector<16x64xf32>
    %144 = arith.mulf %138, %143 : vector<16x64xf32>
    %145 = arith.truncf %144 : vector<16x64xf32> to vector<16x64xbf16>
    %c0_45 = arith.constant 0 : index
    %c0_46 = arith.constant 0 : index
    %146 = vector.load %arg12[%c0_45, %c0_46] : memref<64x32xbf16, #tpu.memory_space<vmem>>, vector<64x32xbf16>
    %cst_47 = arith.constant dense<0.000000e+00> : vector<16x32xf32>
    %147 = tpu.matmul %145, %146, %cst_47 {dimension_numbers = #tpu.dot_dimension_numbers<[1], [0], [0], [1], [0, 0, 1, 1], [], []>} : vector<16x64xbf16>, vector<64x32xbf16>, vector<16x32xf32> -> vector<16x32xf32>
    %c0_48 = arith.constant 0 : index
    %c0_49 = arith.constant 0 : index
    %148 = vector.load %arg13[%c0_48, %c0_49] : memref<1x32xf32, #tpu.memory_space<vmem>>, vector<1x32xf32>
    %149 = vector.broadcast %148 : vector<1x32xf32> to vector<16x32xf32>
    %150 = arith.addf %147, %149 : vector<16x32xf32>
    %151 = arith.addf %106, %150 : vector<16x32xf32>
    %152 = vector.shape_cast %151 : vector<16x32xf32> to vector<2x8x32xf32>
    %c0_50 = arith.constant 0 : index
    %c0_51 = arith.constant 0 : index
    %c0_52 = arith.constant 0 : index
    %153 = vector.load %arg14[%c0_50, %c0_51, %c0_52] : memref<2x8x32xf32, #tpu.memory_space<vmem>>, vector<2x8x32xf32>
    tpu.vector_store %arg14[%c0_50, %c0_51, %c0_52], %152 {strides = array<i32>} : memref<2x8x32xf32, #tpu.memory_space<vmem>>, vector<2x8x32xf32>,
    return
  }
  func.func @transform_0(%arg0: i32) -> (i32, i32, i32) {
    %c0_i32 = arith.constant 0 : i32
    %c0_i32_0 = arith.constant 0 : i32
    %c0_i32_1 = arith.constant 0 : i32
    return %arg0, %c0_i32, %c0_i32_0 : i32, i32, i32
  }
  func.func @transform_1(%arg0: i32) -> (i32, i32) {
    %c0_i32 = arith.constant 0 : i32
    %c0_i32_0 = arith.constant 0 : i32
    %c0_i32_1 = arith.constant 0 : i32
    return %c0_i32, %c0_i32_0 : i32, i32
  }
  func.func @transform_2(%arg0: i32) -> (i32, i32) {
    %c0_i32 = arith.constant 0 : i32
    %c0_i32_0 = arith.constant 0 : i32
    %c0_i32_1 = arith.constant 0 : i32
    return %c0_i32, %c0_i32_0 : i32, i32
  }
  func.func @transform_3(%arg0: i32) -> (i32, i32) {
    %c0_i32 = arith.constant 0 : i32
    %c0_i32_0 = arith.constant 0 : i32
    %c0_i32_1 = arith.constant 0 : i32
    return %c0_i32, %c0_i32_0 : i32, i32
  }
  func.func @transform_4(%arg0: i32) -> (i32, i32) {
    %c0_i32 = arith.constant 0 : i32
    %c0_i32_0 = arith.constant 0 : i32
    %c0_i32_1 = arith.constant 0 : i32
    return %c0_i32, %c0_i32_0 : i32, i32
  }
  func.func @transform_5(%arg0: i32) -> (i32, i32, i32) {
    %c0_i32 = arith.constant 0 : i32
    %c0_i32_0 = arith.constant 0 : i32
    %c0_i32_1 = arith.constant 0 : i32
    %c0_i32_2 = arith.constant 0 : i32
    return %c0_i32, %c0_i32_0, %c0_i32_1 : i32, i32, i32
  }
  func.func @transform_6(%arg0: i32) -> (i32, i32) {
    %c0_i32 = arith.constant 0 : i32
    %c0_i32_0 = arith.constant 0 : i32
    %c0_i32_1 = arith.constant 0 : i32
    return %c0_i32, %c0_i32_0 : i32, i32
  }
  func.func @transform_7(%arg0: i32) -> (i32, i32) {
    %c0_i32 = arith.constant 0 : i32
    %c0_i32_0 = arith.constant 0 : i32
    %c0_i32_1 = arith.constant 0 : i32
    return %c0_i32, %c0_i32_0 : i32, i32
  }
  func.func @transform_8(%arg0: i32) -> (i32, i32) {
    %c0_i32 = arith.constant 0 : i32
    %c0_i32_0 = arith.constant 0 : i32
    %c0_i32_1 = arith.constant 0 : i32
    return %c0_i32, %c0_i32_0 : i32, i32
  }
  func.func @transform_9(%arg0: i32) -> (i32, i32) {
    %c0_i32 = arith.constant 0 : i32
    %c0_i32_0 = arith.constant 0 : i32
    %c0_i32_1 = arith.constant 0 : i32
    return %c0_i32, %c0_i32_0 : i32, i32
  }
  func.func @transform_10(%arg0: i32) -> (i32, i32) {
    %c0_i32 = arith.constant 0 : i32
    %c0_i32_0 = arith.constant 0 : i32
    %c0_i32_1 = arith.constant 0 : i32
    return %c0_i32, %c0_i32_0 : i32, i32
  }
  func.func @transform_11(%arg0: i32) -> (i32, i32) {
    %c0_i32 = arith.constant 0 : i32
    %c0_i32_0 = arith.constant 0 : i32
    %c0_i32_1 = arith.constant 0 : i32
    return %c0_i32, %c0_i32_0 : i32, i32
  }
  func.func @transform_12(%arg0: i32) -> (i32, i32) {
    %c0_i32 = arith.constant 0 : i32
    %c0_i32_0 = arith.constant 0 : i32
    %c0_i32_1 = arith.constant 0 : i32
    return %c0_i32, %c0_i32_0 : i32, i32
  }
  func.func @transform_13(%arg0: i32) -> (i32, i32, i32) {
    %c0_i32 = arith.constant 0 : i32
    %c0_i32_0 = arith.constant 0 : i32
    %c0_i32_1 = arith.constant 0 : i32
    return %arg0, %c0_i32, %c0_i32_0 : i32, i32, i32
  }
}

</mosaic_0001>

<bundles_post_ra>
// kernel: tpu_custom_call.1
= control target key start
LH: loop header
LB: loop body
LE: loop exit
PB: predicated region body
PF: predicated region fallthrough
CT: control target
= control target key end

     0   :  { %s2337_s0 = inlined_call_operand.vmem [shape: f32[4,8,32], index: 0, kind: input, shape index: {}]   ;;  %s2338_s1 = inlined_call_operand.hbm [shape: f32[1,32], index: 1, kind: input, shape index: {}]   ;;  %s2339_s2 = inlined_call_operand.vmem [shape: f32[1,32], index: 2, kind: input, shape index: {}]   ;;  %s2340_s3 = inlined_call_operand.vmem [shape: bf16[32,96], index: 3, kind: input, shape index: {}]   ;;  %s2341_s4 = inlined_call_operand.vmem [shape: f32[1,96], index: 4, kind: input, shape index: {}]   ;;  %s2342_s5 = inlined_call_operand.hbm [shape: bf16[4,8,32], index: 5, kind: input, shape index: {}]   ;;  %s2343_s6 = inlined_call_operand.vmem [shape: f32[1,32], index: 6, kind: input, shape index: {}]   ;;  %s2344_s7 = inlined_call_operand.vmem [shape: f32[1,32], index: 7, kind: input, shape index: {}]   ;;  %s2345_s8 = inlined_call_operand.vmem [shape: f32[1,32], index: 8, kind: input, shape index: {}]   ;;  %s2346_s9 = inlined_call_operand.hbm [shape: bf16[32,64], index: 9, kind: input, shape index: {}]   ;;  %s2347_s10 = inlined_call_operand.vmem [shape: f32[1,64], index: 10, kind: input, shape index: {}]   ;;  %s2348_s11 = inlined_call_operand.vmem [shape: bf16[64,32], index: 11, kind: input, shape index: {}]   ;;  %s2349_s12 = inlined_call_operand.vmem [shape: f32[1,32], index: 12, kind: input, shape index: {}]   ;;  %s2350_s13 = inlined_call_operand.hbm [shape: f32[4,8,32], index: 13, kind: output, shape index: {}]  }
   0x1   :  { %2356 = sst [smem:[#allocation17_spill]] %s2342_s5 }
   0x2   :  { %18 = vsyncpa [#allocation3], 0 }
   0x3   :  { %19 = vsyncpa [#allocation6], 0 }
   0x4   :  { %20 = vsyncpa [#allocation4], 0 }
   0x5   :  { %22 = vsyncpa [#allocation4 + $0x1], 0  ;;  %s1996_s25 = smov 0   ;;  %s1998_s26 = smov 0  }
   0x6   :  { %s2000_s27 = smov 0   ;;  %s2002_s28 = smov 0  }
   0x7 LB: > { %2357 = sst [smem:[#allocation12_spill]] %s1899_s25  ;;  %s2017_s29 = sadd.s32 4294967295, %s1911_s28   ;;  %s1911_s28 = sphi %s2002_s28, %s2369_s28   ;;  %s1907_s27 = sphi %s2000_s27, %s2371_s27   ;;  %s1903_s26 = sphi %s1998_s26, %s2373_s26   ;;  %s1899_s25 = sphi %s1996_s25, %s2372_s25  }
   0x8   : > { %2358 = sst [smem:[#allocation13_spill]] %s1907_s27  ;;  %s1533_s30 = sadd.s32 4294967294, %s1911_s28  }
   0x9   : > { %s2021_s14 = sadd.s32 1, %s1911_s28   ;;  %s313_s15 = sadd.s32 1, %s1907_s27 }
   0xa   : > { %2359 = sst [smem:[#allocation14_spill]] %s2021_s14  ;;  %s310_s16 = ssub.s32 %s1911_s28, %s2021_s14 }
   0xb   : > { %p323_p0 = scmp.ne.s32.totalorder %s1907_s27, %s1903_s26  ;;  %p311_p1 = scmp.eq.s32.totalorder %s310_s16, 0 }
   0xc   : > { %p324_p2 = scmp.eq.s32.totalorder %s2017_s29, 1  ;;  %p329_p3 = scmp.ne.s32.totalorder %s1903_s26, %s1899_s25 }
   0xd   : > { %p330_p4 = scmp.eq.s32.totalorder %s1533_s30, 1  ;;  %p1534_p7 = scmp.ge.s32.totalorder %s1911_s28, 1 }
   0xe   : > { %s2032_s17 = scalar_select %p311_p1, %s1907_s27, %s313_s15  }
   0xf   : > { %p2034_p5 = por %p324_p2, %p323_p0  ;;  %p2038_p6 = por %p330_p4, %p329_p3 }
  0x10   : > { %2360 = sst [smem:[#allocation15_spill]] %s2032_s17  ;;  %p337_p8 = scmp.lt.s32.totalorder %s1911_s28, 3 }
  0x11   : > { %s2362_s19 = scalar_select %p2038_p6, 1, 0 }
  0x12   : > { %p1645_p9 = scmp.eq.s32.totalorder %s2017_s29, 0  ;;  %p2045_p10 = pnand %p1534_p7, %p337_p8 }
  0x13   : > { %2363 = sst [smem:[#allocation16_spill]] %s2362_s19  ;;  %s1913_s24 = smov [#allocation5]  }
  0x14   : > { %s2365_s5 = sld [smem:[#allocation17_spill]]  ;;  %p1631_p11 = pneg %p2045_p10 }
  0x15   : > { %s371_s30 = sshll.u32 %s1913_s24, 4  ;;  %s349_s21 = sshll.u32 %s2338_s1, 4  ;;  %s372_s30 = int_to_ptr.vmem [resolvable:$true] %s371_s30  ;;  %s350_s21 = int_to_ptr.hbm [resolvable:$true] %s349_s21 }
  0x16   : > { %p2056_p12 = pnand %p1645_p9, %p1631_p11  ;;  %s1914_s22 = smov 64  }
  0x17   : > { %s1916_s27 = smov [#allocation2]   ;;  %s392_s25 = sshll.u32 %s2346_s9, 4  ;;  %s393_s25 = int_to_ptr.hbm [resolvable:$true] %s392_s25 }
  0x18   : > { %s351_s24 = sshll.u32 %s1916_s27, 4  ;;  %s1917_s17 = smov [#allocation7]   ;;  %s352_s24 = int_to_ptr.vmem [resolvable:$true] %s351_s24 }
  0x19   : > { %1634 = dma.hbm_to_vmem [thread:$0]  (!%p2056_p12), %s350_s21, 16, %s352_s24, [#allocation3]  }
  0x1a   : > { %s369_s23 = sshll.u32 %s2365_s5, 4  ;;  %s1915_s5 = smov 4   ;;  %s370_s23 = int_to_ptr.hbm [resolvable:$true] %s369_s23 }
  0x1b   : > { %1637 = dma.hbm_to_vmem [thread:$0]  (!%p2056_p12), %s370_s23, 256, %s372_s30, [#allocation6], %s1914_s22, %s1914_s22, %s1915_s5  }
  0x1c   : > { %s394_s16 = sshll.u32 %s1917_s17, 4  ;;  %428 = sbr.rel (%p2045_p10) target bundleno = 2029 (0x7ed), region = 72  ;;  %s395_s16 = int_to_ptr.vmem [resolvable:$true] %s394_s16 }
  0x1d   : > { %1640 = dma.hbm_to_vmem [thread:$0]  (!%p2056_p12), %s393_s25, 256, %s395_s16, [#allocation6], %s1914_s22, %s1914_s22, %s1915_s5  }
  0x21   : > { %1886 = dma.done.wait (%p1645_p9), [#allocation3], 16  }
  0x22   : > { %1888 = vsyncadd (%p1645_p9), [#allocation3], 4294967280 }
  0x23   : > { %1890 = dma.done.wait (%p1645_p9), [#allocation6], 512  }
  0x24   : > { %1892 = vsyncadd (%p1645_p9), [#allocation6], 4294966784  ;;  %s1544_s27 = sshll.u32 %s2017_s29, 1  ;;  %vm495_vm0 = vcmask 261120   ;;  %v1918_v4 = vmov 32.0   ;;  %v1609_v21 = vld [vmem:[%s2340_s3 + $0x8] sm:$0xff] }
  0x25   : > { %p484_p13 = scmp.lt.s32.totalorder %s1544_s27, 3  ;;  %1705 = vrcp.f32 %v1918_v4  ;;  %587 = vmatpush.bf16.msra.mxu0 %v1609_v21  ;;  %v1608_v23 = vld [vmem:[%s2340_s3] sm:$0xff]  ;;  %s1919_s16 = smov 104   ;;  %vm628_vm8 = vcmask 64512   ;;  %vm917_vm9 = vcmask 1043456  }
  0x26   : > { %v1697_v42 = vld [vmem:[#allocation2] ss:$0 sm:$0xff]  ;;  %s1922_s25 = smov 96   ;;  %s1923_s14 = smov 64  }
  0x27   : > { %s2375_s27 = smov (!%p484_p13, %s1544_s27), 3  ;;  %v1698_v47 = vld [vmem:[%s2339_s2] ss:$0 sm:$0xff]  ;;  %s480_s23 = sand.u32 1, %s1903_s26  }
  0x28   : > { %s1545_s5 = sshll.u32 %s2375_s27, 3  ;;  %v1699_v52 = vld [vmem:[%s2341_s4] ss:$0 sm:$0xff]  ;;  %s1920_s27 = smov 120  }
  0x29   : > { %s487_s19 = scalar_lea.vmem %s2337_s0, %s1545_s5  ;;  %588 = vmatpush.bf16.msra.mxu0 %v1608_v23  ;;  %s1921_s5 = smov 112  }
  0x2a   : > { %v2086_v0 = vld [vmem:[%s487_s19] sm:$0xff]  ;;  %v2090_v2 = vld [vmem:[%s487_s19 + $0x8] sm:$0xff]  ;;  %s1543_s21 = sshll.u32 %s480_s23, 4  ;;  %s1616_s22 = sshll.u32 %s2017_s29, 4 }
  0x2b   : > { %v496_v1 = vsel %vm495_vm0, %v2086_v0, 0.0  ;;  %v499_v3 = vsel %vm495_vm0, %v2090_v2, 0.0  ;;  %v1706_v5 = vpop.eup %1705  ;;  %s1425_s29 = scalar_lea.sflag [#allocation4], %s480_s23  ;;  %s1861_s15 = scalar_lea.hbm %s2350_s13, 32 }
  0x2c   : > { %497 = vadd.xlane.f32.xlu0 %v496_v1  ;;  %v503_v6 = vmul.f32 32.0, %v1706_v5  ;;  %vm507_vm1 = vweird.f32 %v1706_v5 }
  0x2e   : > { %v504_v7 = vsub.f32 1.0, %v503_v6 }
  0x30   : > { %v505_v8 = vmul.f32 %v1706_v5, %v504_v7 }
  0x32   : > { %v506_v9 = vadd.f32 %v1706_v5, %v505_v8 }
  0x34   : > { %500 = vadd.xlane.f32.xlu0 %v499_v3  ;;  %v2094_v10 = vsel %vm507_vm1, %v1706_v5, %v506_v9 }
  0x9f   : > { %v498_v11 = vpop.xlane.xlu0 %497 }
  0xa0   : > { %v509_v12 = vmul.f32 %v2094_v10, %v498_v11 }
  0xa2   : > { %v511_v13 = vsub.f32 %v2086_v0, %v509_v12 }
  0xa4   : > { %v513_v14 = vmul.f32 %v511_v13, %v511_v13 }
  0xa6   : > { %v515_v15 = vsel %vm495_vm0, %v513_v14, 0.0 }
  0xa7   : > { %516 = vadd.xlane.f32.xlu1 %v515_v15  ;;  %v501_v16 = vpop.xlane.xlu0 %500 }
  0xa8   : > { %v510_v17 = vmul.f32 %v2094_v10, %v501_v16 }
  0xaa   : > { %v512_v18 = vsub.f32 %v2090_v2, %v510_v17 }
  0xac   : > { %v514_v19 = vmul.f32 %v512_v18, %v512_v18 }
  0xae   : > { %v518_v20 = vsel %vm495_vm0, %v514_v19, 0.0 }
  0xaf   : > { %519 = vadd.xlane.f32.xlu1 %v518_v20 }
 0x11a   : > { %v517_v22 = vpop.xlane.xlu1 %516 }
 0x11b   : > { %v521_v24 = vmul.f32 %v517_v22, %v2094_v10 }
 0x11d   : > { %v523_v25 = vadd.f32 1e-05, %v521_v24 }
 0x11f   : > { %1707 = vrsqrt.f32 %v523_v25  ;;  %vm531_vm3 = vweird.f32 %v523_v25 }
 0x122   : > { %v520_v26 = vpop.xlane.xlu1 %519 }
 0x123   : > { %v522_v27 = vmul.f32 %v520_v26, %v2094_v10 }
 0x125   : > { %v1708_v28 = vpop.eup %1707  ;;  %v524_v29 = vadd.f32 1e-05, %v522_v27 }
 0x126   : > { %v526_v30 = vmul.f32 %v1708_v28, %v523_v25  ;;  %vm532_vm2 = vweird.f32 %v1708_v28 }
 0x127   : > { %1709 = vrsqrt.f32 %v524_v29  ;;  %vm533_vm4 = vmor %vm531_vm3, %vm532_vm2  ;;  %vm541_vm6 = vweird.f32 %v524_v29 }
 0x128   : > { %v527_v31 = vmul.f32 %v1708_v28, %v526_v30 }
 0x12a   : > { %v528_v32 = vmul.f32 0.5, %v527_v31 }
 0x12c   : > { %v529_v33 = vsub.f32 1.5, %v528_v32 }
 0x12d   : > { %v1710_v34 = vpop.eup %1709 }
 0x12e   : > { %v530_v35 = vmul.f32 %v1708_v28, %v529_v33  ;;  %v536_v36 = vmul.f32 %v1710_v34, %v524_v29  ;;  %vm542_vm5 = vweird.f32 %v1710_v34 }
 0x12f   : > { %vm543_vm7 = vmor %vm541_vm6, %vm542_vm5 }
 0x130   : > { %v537_v37 = vmul.f32 %v1710_v34, %v536_v36  ;;  %v534_v38 = vsel %vm533_vm4, %v1708_v28, %v530_v35 }
 0x131   : > { %v545_v41 = vmul.f32 %v534_v38, %v511_v13 }
 0x132   : > { %v538_v39 = vmul.f32 0.5, %v537_v37 }
 0x133   : > { %v550_v46 = vmul.f32 %v1697_v42, %v545_v41 }
 0x134   : > { %v539_v40 = vsub.f32 1.5, %v538_v39 }
 0x135   : > { %v555_v49 = vadd.f32 %v1698_v47, %v550_v46 }
 0x136   : > { %v540_v43 = vmul.f32 %v1710_v34, %v539_v40 }
 0x138   : > { %v544_v44 = vsel %vm543_vm7, %v1710_v34, %v540_v43 }
 0x139   : > { %v546_v45 = vmul.f32 %v544_v44, %v512_v18 }
 0x13b   : > { %v551_v48 = vmul.f32 %v1697_v42, %v546_v45 }
 0x13d   : > { %v556_v50 = vadd.f32 %v1698_v47, %v551_v48 }
 0x13f   : > { %v557_v51 = vpack.c.bf16 %v556_v50, %v555_v49 }
 0x141   : > { %1554 = vmatmul.msk.bf16.vlgmr.msra.gmra.mxu0 %vm495_vm0, %v557_v51 }
 0x1be   : > { %v590_v53 = vpop.f32.mrf.mxu0 }
 0x1bf   : > { %v591_v54 = vadd.f32 %v1699_v52, %v590_v53 }
 0x1c1   : > { %609 = vrot.lane.b32.xlu1 %v591_v54, %s1919_s16  ;;  %597 = vrot.lane.b32.xlu2 %v591_v54, %s1920_s27  ;;  %v615_v60 = vpack.c.bf16 %v591_v54, %v591_v54 }
 0x1c3   : > { %v624_v61 = vunpack.c.l.b16 %v615_v60 }
 0x1c5   : > { %v2121_v62 = vpack.c.b16 %v624_v61, %v624_v61 }
 0x1c6   : > { %v592_v55 = vpop.f32.mrf.mxu0 }
 0x1c7   : > { %v593_v56 = vadd.f32 %v1699_v52, %v592_v55 }
 0x1c9   : > { %599 = vrot.lane.b32.xlu0 %v593_v56, %s1920_s27  ;;  %605 = vrot.lane.b32.xlu2 %v593_v56, %s1921_s5  ;;  %v616_v57 = vpack.c.bf16 %v593_v56, %v593_v56  ;;  %s482_s27 = scalar_lea.vmem [#allocation8], %s1543_s21 }
 0x1cb   : > { %v649_v58 = vunpack.c.l.b16 %v616_v57 }
 0x1cd   : > { %v2117_v59 = vpack.c.b16 %v649_v58, %v649_v58 }
 0x1d1   : > { %603 = vrot.lane.b32.xlu2 %v591_v54, %s1921_s5  ;;  %s1437_s5 = sshll.u32 %s482_s27, 4  ;;  %s1438_s5 = int_to_ptr.vmem [resolvable:$true] %s1437_s5 }
 0x1d9   : > { %611 = vrot.lane.b32.xlu2 %v593_v56, %s1919_s16  ;;  %s1436_s16 = scalar_lea.hbm %s2350_s13, %s1616_s22 }
 0x1e1   : > { %651 = vrot.lane.b32.xlu2 %v2117_v59, %s1922_s25 }
 0x1e9   : > { %626 = vrot.lane.b32.xlu2 %v2121_v62, %s1922_s25 }
 0x21b   : > { %v598_v63 = vpop.permute.xlu2 %597 }
 0x21c   : > { %v617_v1 = vpack.c.bf16 %v598_v63, %v598_v63 }
 0x21e   : > { %v673_v3 = vunpack.c.l.b16 %v617_v1 }
 0x220   : > { %v2125_v4 = vpack.c.b16 %v673_v3, %v673_v3 }
 0x222   : > { %675 = vrot.lane.b32.xlu0 %v2125_v4, %s1922_s25 }
 0x223   : > { %v606_v5 = vpop.permute.xlu2 %605 }
 0x224   : > { %v620_v6 = vpack.c.bf16 %v606_v5, %v606_v5 }
 0x226   : > { %v745_v7 = vunpack.c.l.b16 %v620_v6 }
 0x228   : > { %v2129_v8 = vpack.c.b16 %v745_v7, %v745_v7 }
 0x22a   : > { %747 = vrot.lane.b32.xlu1 %v2129_v8, %s1922_s25 }
 0x22b   : > { %v604_v9 = vpop.permute.xlu2 %603 }
 0x22c   : > { %v619_v11 = vpack.c.bf16 %v604_v9, %v604_v9 }
 0x22e   : > { %v721_v12 = vunpack.c.l.b16 %v619_v11 }
 0x230   : > { %v2133_v13 = vpack.c.b16 %v721_v12, %v721_v12 }
 0x232   : > { %723 = vrot.lane.b32.xlu1 %v2133_v13, %s1922_s25 }
 0x233   : > { %v610_v14 = vpop.permute.xlu1 %609  ;;  %v612_v15 = vpop.permute.xlu2 %611 }
 0x234   : > { %v621_v16 = vpack.c.bf16 %v610_v14, %v610_v14  ;;  %v622_v24 = vpack.c.bf16 %v612_v15, %v612_v15 }
 0x236   : > { %v769_v17 = vunpack.c.l.b16 %v621_v16  ;;  %v793_v27 = vunpack.c.l.b16 %v622_v24 }
 0x238   : > { %v2137_v18 = vpack.c.b16 %v769_v17, %v769_v17  ;;  %v2148_v29 = vpack.c.b16 %v793_v27, %v793_v27 }
 0x23a   : > { %771 = vrot.lane.b32.xlu2 %v2137_v18, %s1922_s25 }
 0x23b   : > { %v600_v19 = vpop.permute.xlu0 %599  ;;  %v652_v20 = vpop.permute.xlu2 %651 }
 0x23c   : > { %v618_v21 = vpack.c.bf16 %v600_v19, %v600_v19  ;;  %v657_v22 = vsel %vm628_vm8, %v652_v20, 0 }
 0x23d   : > { %666 = vmatpush.bf16.xpose.msra.mxu2 %v657_v22 }
 0x23e   : > { %v697_v23 = vunpack.c.l.b16 %v618_v21 }
 0x240   : > { %v2142_v25 = vpack.c.b16 %v697_v23, %v697_v23 }
 0x242   : > { %699 = vrot.lane.b32.xlu0 %v2142_v25, %s1922_s25 }
 0x243   : > { %v627_v26 = vpop.permute.xlu2 %626 }
 0x244   : > { %1556 = vmatmul.msk.bf16.vlgmr.msra.gmra.mxu2 %vm628_vm8, %v616_v57  ;;  %v633_v28 = vsel %vm628_vm8, %v627_v26, 0 }
 0x245   : > { %642 = vmatpush.bf16.xpose.msra.mxu1 %v633_v28 }
 0x24a   : > { %795 = vrot.lane.b32.xlu0 %v2148_v29, %s1922_s25  ;;  %s1439_s25 = sshll.u32 %s1436_s16, 4  ;;  %s1440_s25 = int_to_ptr.hbm [resolvable:$true] %s1439_s25 }
 0x24c   : > { %1555 = vmatmul.msk.bf16.vlgmr.msra.gmra.mxu1 %vm628_vm8, %v615_v60 }
 0x294   : > { %v676_v30 = vpop.permute.xlu0 %675  ;;  %v772_v31 = vpop.permute.xlu2 %771 }
 0x295   : > { %v681_v32 = vsel %vm628_vm8, %v676_v30, 0  ;;  %v777_v33 = vsel %vm628_vm8, %v772_v31, 0 }
 0x296   : > { %690 = vmatpush.bf16.xpose.msra.mxu3 %v681_v32 }
 0x29c   : > { %v748_v34 = vpop.permute.xlu1 %747 }
 0x29d   : > { %1557 = vmatmul.msk.bf16.vlgmr.msra.gmra.mxu3 %vm628_vm8, %v617_v1  ;;  %v753_v35 = vsel %vm628_vm8, %v748_v34, 0 }
 0x29e   : > { %786 = vmatpush.bf16.xpose.msrb.mxu3 %v777_v33  ;;  %762 = vmatpush.bf16.xpose.msrb.mxu2 %v753_v35 }
 0x2a4   : > { %v724_v36 = vpop.permute.xlu1 %723 }
 0x2a5   : > { %1560 = vmatmul.msk.bf16.vlgmr.msrb.gmra.mxu2 %vm628_vm8, %v620_v6  ;;  %v729_v37 = vsel %vm628_vm8, %v724_v36, 0 }
 0x2a6   : > { %738 = vmatpush.bf16.xpose.msrb.mxu1 %v729_v37 }
 0x2ad   : > { %1559 = vmatmul.msk.bf16.vlgmr.msrb.gmra.mxu1 %vm628_vm8, %v619_v11  ;;  %1561 = vmatmul.msk.bf16.vlgmr.msrb.gmra.mxu3 %vm628_vm8, %v621_v16 }
 0x2b4   : > { %v700_v38 = vpop.permute.xlu0 %699 }
 0x2b5   : > { %v705_v39 = vsel %vm628_vm8, %v700_v38, 0 }
 0x2b6   : > { %714 = vmatpush.bf16.xpose.msrb.mxu0 %v705_v39 }
 0x2bc   : > { %v796_v40 = vpop.permute.xlu0 %795 }
 0x2bd   : > { %v801_v41 = vsel %vm628_vm8, %v796_v40, 0  ;;  %1558 = vmatmul.msk.bf16.vlgmr.msrb.gmra.mxu0 %vm628_vm8, %v618_v21 }
 0x2be   : > { %810 = vmatpush.bf16.xpose.msra.mxu0 %v801_v41 }
 0x2c7   : > { %v668_v42 = vpop.f32.mrf.mxu2 }
 0x2c8   : > { %v819_v43 = vsel %vm628_vm8, %v668_v42, -inf }
 0x2c9   : > { %820 = vmax.xlane.f32.xlu2 %v819_v43  ;;  %v644_v44 = vpop.f32.mrf.mxu1 }
 0x2ca   : > { %v816_v45 = vsel %vm628_vm8, %v644_v44, -inf }
 0x2cb   : > { %817 = vmax.xlane.f32.xlu1 %v816_v45 }
 0x2cd   : > { %1562 = vmatmul.msk.bf16.vlgmr.msra.gmra.mxu0 %vm628_vm8, %v622_v24 }
 0x2cf   : > { %v670_v46 = vpop.f32.mrf.mxu2 }
 0x2d1   : > { %v646_v47 = vpop.f32.mrf.mxu1 }
 0x2e1   : > { %955 = vrot.lane.b32.xlu2 %v2125_v4, %s1923_s14 }
 0x2e4   : > { %912 = vrot.lane.b32.xlu1 %v2121_v62, %s1923_s14 }
 0x320   : > { %v692_v48 = vpop.f32.mrf.mxu3 }
 0x321   : > { %v822_v57 = vsel %vm628_vm8, %v692_v48, -inf }
 0x328   : > { %v694_v49 = vpop.f32.mrf.mxu3  ;;  %v2171_v50 = vpop.f32.mrf.mxu2 }
 0x329   : > { %v831_v51 = vsel %vm628_vm8, %v2171_v50, -inf }
 0x32a   : > { %832 = vmax.xlane.f32.xlu1 %v831_v51  ;;  %v740_v52 = vpop.f32.mrf.mxu1 }
 0x32b   : > { %v828_v53 = vsel %vm628_vm8, %v740_v52, -inf }
 0x32c   : > { %829 = vmax.xlane.f32.xlu0 %v828_v53 }
 0x330   : > { %v766_v54 = vpop.f32.mrf.mxu2  ;;  %v2176_v55 = vpop.f32.mrf.mxu3 }
 0x331   : > { %v834_v14 = vsel %vm628_vm8, %v2176_v55, -inf }
 0x332   : > { %v742_v56 = vpop.f32.mrf.mxu1 }
 0x334   : > { %823 = vmax.xlane.f32.xlu0 %v822_v57 }
 0x338   : > { %v790_v58 = vpop.f32.mrf.mxu3 }
 0x33a   : > { %v716_v60 = vpop.f32.mrf.mxu0 }
 0x33b   : > { %v825_v61 = vsel %vm628_vm8, %v716_v60, -inf }
 0x33c   : > { %826 = vmax.xlane.f32.xlu2 %v825_v61  ;;  %v821_v62 = vpop.xlane.xlu2 %820 }
 0x33d   : > { %v841_v17 = vsub.f32 %v668_v42, %v821_v62 }
 0x33e   : > { %v818_v63 = vpop.xlane.xlu1 %817 }
 0x33f   : > { %v840_v1 = vsub.f32 %v644_v44, %v818_v63  ;;  %v850_v19 = vmul.f32 1.442695, %v841_v17 }
 0x341   : > { %v848_v3 = vmul.f32 1.442695, %v840_v1 }
 0x342   : > { %v718_v4 = vpop.f32.mrf.mxu0 }
 0x343   : > { %1711 = vpow2.f32 %v848_v3  ;;  %976 = vrot.lane.b32.xlu1 %v2142_v25, %s1923_s14 }
 0x344   : > { %v956_v5 = vpop.permute.xlu2 %955  ;;  %1713 = vpow2.f32 %v850_v19 }
 0x345   : > { %v961_v6 = vsel %vm917_vm9, %v956_v5, 0 }
 0x346   : > { %970 = vmatpush.bf16.msra.mxu3 %v961_v6 }
 0x348   : > { %934 = vrot.lane.b32.xlu0 %v2117_v59, %s1923_s14 }
 0x349   : > { %v1712_v7 = vpop.eup %1711 }
 0x34a   : > { %v2185_v9 = vpop.f32.mrf.mxu0  ;;  %v864_v11 = vsel %vm628_vm8, %v1712_v7, 0.0  ;;  %v1714_v20 = vpop.eup %1713 }
 0x34b   : > { %865 = vadd.xlane.f32.xlu2 %v864_v11  ;;  %v837_v59 = vsel %vm628_vm8, %v2185_v9, -inf  ;;  %v867_v21 = vsel %vm628_vm8, %v1714_v20, 0.0 }
 0x352   : > { %v814_v12 = vpop.f32.mrf.mxu0 }
 0x353   : > { %835 = vmax.xlane.f32.xlu2 %v834_v14 }
 0x356   : > { %v913_v15 = vpop.permute.xlu1 %912 }
 0x357   : > { %v919_v16 = vsel %vm917_vm9, %v913_v15, 0 }
 0x358   : > { %928 = vmatpush.bf16.msra.mxu1 %v919_v16 }
 0x36d   : > { %838 = vmax.xlane.f32.xlu1 %v837_v59 }
 0x372   : > { %868 = vadd.xlane.f32.xlu0 %v867_v21 }
 0x39d   : > { %v833_v31 = vpop.xlane.xlu1 %832 }
 0x39e   : > { %v845_v35 = vsub.f32 %v2171_v50, %v833_v31 }
 0x39f   : > { %v830_v22 = vpop.xlane.xlu0 %829 }
 0x3a0   : > { %v844_v23 = vsub.f32 %v740_v52, %v830_v22  ;;  %v858_v39 = vmul.f32 1.442695, %v845_v35 }
 0x3a2   : > { %v856_v24 = vmul.f32 1.442695, %v844_v23 }
 0x3a4   : > { %1715 = vpow2.f32 %v856_v24 }
 0x3a7   : > { %v824_v25 = vpop.xlane.xlu0 %823 }
 0x3a8   : > { %v842_v26 = vsub.f32 %v692_v48, %v824_v25 }
 0x3aa   : > { %v2194_v27 = vpop.eup %1715  ;;  %v852_v28 = vmul.f32 1.442695, %v842_v26 }
 0x3ab   : > { %v876_v30 = vsel %vm628_vm8, %v2194_v27, 0.0 }
 0x3ac   : > { %1717 = vpow2.f32 %v852_v28  ;;  %877 = vadd.xlane.f32.xlu0 %v876_v30  ;;  %v1081_v28 = vld [vmem:[#allocation5] sm:$0xf] }
 0x3ad   : > { %v1091_v30 = vsel %vm917_vm9, %v1081_v28, 0 }
 0x3af   : > { %v827_v32 = vpop.xlane.xlu2 %826 }
 0x3b0   : > { %v843_v33 = vsub.f32 %v716_v60, %v827_v32 }
 0x3b2   : > { %v1718_v34 = vpop.eup %1717  ;;  %v854_v36 = vmul.f32 1.442695, %v843_v33 }
 0x3b3   : > { %v870_v37 = vsel %vm628_vm8, %v1718_v34, 0.0 }
 0x3b4   : > { %1719 = vpow2.f32 %v854_v36  ;;  %871 = vadd.xlane.f32.xlu1 %v870_v37 }
 0x3b5   : > { %v977_v38 = vpop.permute.xlu1 %976  ;;  %1721 = vpow2.f32 %v858_v39 }
 0x3b6   : > { %v982_v40 = vsel %vm917_vm9, %v977_v38, 0 }
 0x3b7   : > { %991 = vmatpush.bf16.msrb.mxu0 %v982_v40 }
 0x3ba   : > { %v1720_v41 = vpop.eup %1719  ;;  %v935_v42 = vpop.permute.xlu0 %934 }
 0x3bb   : > { %v940_v43 = vsel %vm917_vm9, %v935_v42, 0  ;;  %v873_v44 = vsel %vm628_vm8, %v1720_v41, 0.0  ;;  %v1722_v46 = vpop.eup %1721 }
 0x3bc   : > { %949 = vmatpush.bf16.msra.mxu2 %v940_v43  ;;  %874 = vadd.xlane.f32.xlu2 %v873_v44  ;;  %v879_v47 = vsel %vm628_vm8, %v1722_v46, 0.0  ;;  %v1082_v43 = vld [vmem:[#allocation5 + $0x4] sm:$0xf] }
 0x3bd   : > { %v1117_v44 = vsel %vm917_vm9, %v1082_v43, 0 }
 0x3be   : > { %v866_v45 = vpop.xlane.xlu2 %865 }
 0x3bf   : > { %1723 = vrcp.f32 %v866_v45  ;;  %v1083_v45 = vld [vmem:[#allocation5 + $0x8] sm:$0xf] }
 0x3c0   : > { %997 = vrot.lane.b32.xlu0 %v2133_v13, %s1923_s14 }
 0x3c4   : > { %880 = vadd.xlane.f32.xlu2 %v879_v47 }
 0x3c5   : > { %v1724_v48 = vpop.eup %1723 }
 0x3c6   : > { %v896_v49 = vmul.f32 %v1724_v48, %v1712_v7  ;;  %v836_v50 = vpop.xlane.xlu2 %835 }
 0x3c7   : > { %v846_v51 = vsub.f32 %v2176_v55, %v836_v50 }
 0x3c8   : > { %v904_v52 = vpack.c.bf16 %v896_v49, %v896_v49  ;;  %1060 = vrot.lane.b32.xlu0 %v2148_v29, %s1923_s14 }
 0x3c9   : > { %v860_v53 = vmul.f32 1.442695, %v846_v51 }
 0x3ca   : > { %1563 = vmatmul.msk.bf16.vlgmr.msra.gmra.mxu1 %vm628_vm8, %v904_v52 }
 0x3cb   : > { %1725 = vpow2.f32 %v860_v53 }
 0x3d1   : > { %v1726_v54 = vpop.eup %1725 }
 0x3d2   : > { %v882_v56 = vsel %vm628_vm8, %v1726_v54, 0.0 }
 0x3d3   : > { %883 = vadd.xlane.f32.xlu1 %v882_v56 }
 0x3dc   : > { %1018 = vrot.lane.b32.xlu2 %v2129_v8, %s1923_s14 }
 0x3e0   : > { %v839_v29 = vpop.xlane.xlu1 %838 }
 0x3e1   : > { %v847_v60 = vsub.f32 %v2185_v9, %v839_v29 }
 0x3e3   : > { %v862_v61 = vmul.f32 1.442695, %v847_v60 }
 0x3e5   : > { %v869_v13 = vpop.xlane.xlu0 %868 }
 0x3e6   : > { %1727 = vrcp.f32 %v869_v13 }
 0x3e7   : > { %1729 = vpow2.f32 %v862_v61 }
 0x3ec   : > { %v1728_v57 = vpop.eup %1727  ;;  %1039 = vrot.lane.b32.xlu1 %v2137_v18, %s1923_s14  ;;  %s1855_s14 = sshra.s32 %s1440_s25, 4  ;;  %s1856_s14 = int_to_ptr.hbm [resolvable:$true] %s1855_s14 }
 0x3ed   : > { %v897_v55 = vmul.f32 %v1728_v57, %v1714_v20  ;;  %v1730_v62 = vpop.eup %1729  ;;  %v1084_v57 = vld [vmem:[#allocation5 + $0xc] sm:$0xf]  ;;  %s1857_s19 = scalar_lea.hbm %s1856_s14, 16  ;;  %p1862_p3 = scmp.lt.s32.totalorder %s1856_s14, %s2350_s13 }
 0x3ee   : > { %v885_v63 = vsel %vm628_vm8, %v1730_v62, 0.0  ;;  %p1858_p0 = scmp.ne.s32.totalorder %s1856_s14, %s1857_s19  ;;  %p1863_p4 = scmp.lt.s32.totalorder %s1861_s15, %s1857_s19 }
 0x3ef   : > { %v905_v58 = vpack.c.bf16 %v897_v55, %v897_v55  ;;  %v1163_v55 = vsel %vm917_vm9, %v1084_v57, 0 }
 0x3f0   : > { %p1859_p1 = pnand %p1858_p0, %p2034_p5  ;;  %p1864_p7 = por %p1863_p4, %p1862_p3 }
 0x3f1   : > { %1564 = vmatmul.msk.bf16.vlgmr.msra.gmra.mxu2 %vm628_vm8, %v905_v58 }
 0x3f2   : > { %p1860_p2 = pneg %p1859_p1 }
 0x3f4   : > { %p1865_p8 = pnand %p1864_p7, %p1860_p2 }
 0x405   : > { %886 = vadd.xlane.f32.xlu2 %v885_v63 }
 0x41f   : > { %v878_v8 = vpop.xlane.xlu0 %877 }
 0x420   : > { %1731 = vrcp.f32 %v878_v8  ;;  %v1700_v8 = vld [vmem:[%s2343_s6] ss:$0 sm:$0xff] }
 0x426   : > { %v1732_v3 = vpop.eup %1731 }
 0x427   : > { %v872_v1 = vpop.xlane.xlu1 %871  ;;  %v900_v6 = vmul.f32 %v1732_v3, %v2194_v27 }
 0x428   : > { %1733 = vrcp.f32 %v872_v1 }
 0x429   : > { %v908_v12 = vpack.c.bf16 %v900_v6, %v900_v6 }
 0x42e   : > { %v1734_v4 = vpop.eup %1733 }
 0x42f   : > { %v898_v18 = vmul.f32 %v1734_v4, %v1718_v34  ;;  %v875_v5 = vpop.xlane.xlu2 %874 }
 0x430   : > { %1735 = vrcp.f32 %v875_v5 }
 0x431   : > { %v906_v7 = vpack.c.bf16 %v898_v18, %v898_v18 }
 0x432   : > { %v998_v11 = vpop.permute.xlu0 %997 }
 0x433   : > { %v1003_v9 = vsel %vm917_vm9, %v998_v11, 0  ;;  %1565 = vmatmul.msk.bf16.vlgmr.msra.gmra.mxu3 %vm628_vm8, %v906_v7 }
 0x434   : > { %1012 = vmatpush.bf16.msrb.mxu1 %v1003_v9 }
 0x436   : > { %v1736_v14 = vpop.eup %1735 }
 0x437   : > { %v899_v15 = vmul.f32 %v1736_v14, %v1720_v41  ;;  %1567 = vmatmul.msk.bf16.vlgmr.msrb.gmra.mxu1 %vm628_vm8, %v908_v12  ;;  %v881_v16 = vpop.xlane.xlu2 %880 }
 0x438   : > { %1737 = vrcp.f32 %v881_v16  ;;  %1100 = vmatpush.bf16.msra.mxu1 %v1091_v30 }
 0x439   : > { %v907_v17 = vpack.c.bf16 %v899_v15, %v899_v15 }
 0x43a   : > { %v1061_v19 = vpop.permute.xlu0 %1060 }
 0x43b   : > { %v1066_v59 = vsel %vm917_vm9, %v1061_v19, 0  ;;  %1566 = vmatmul.msk.bf16.vlgmr.msrb.gmra.mxu0 %vm628_vm8, %v907_v17 }
 0x43c   : > { %1075 = vmatpush.bf16.msra.mxu0 %v1066_v59 }
 0x43e   : > { %v1738_v20 = vpop.eup %1737 }
 0x43f   : > { %v901_v21 = vmul.f32 %v1738_v20, %v1722_v46  ;;  %v1019_v22 = vpop.permute.xlu2 %1018  ;;  %v1140_v46 = vsel %vm917_vm9, %v1083_v45, 0 }
 0x440   : > { %v1024_v23 = vsel %vm917_vm9, %v1019_v22, 0  ;;  %1172 = vmatpush.bf16.msrb.mxu0 %v1163_v55 }
 0x441   : > { %v909_v24 = vpack.c.bf16 %v901_v21, %v901_v21  ;;  %1033 = vmatpush.bf16.msrb.mxu2 %v1024_v23 }
 0x444   : > { %1568 = vmatmul.msk.bf16.vlgmr.msrb.gmra.mxu2 %vm628_vm8, %v909_v24 }
 0x445   : > { %1126 = vmatpush.bf16.msra.mxu2 %v1117_v44 }
 0x446   : > { %v884_v27 = vpop.xlane.xlu1 %883 }
 0x447   : > { %v930_v25 = vpop.f32.mrf.mxu1  ;;  %1739 = vrcp.f32 %v884_v27 }
 0x44d   : > { %v1740_v31 = vpop.eup %1739 }
 0x44e   : > { %v902_v32 = vmul.f32 %v1740_v31, %v1726_v54 }
 0x44f   : > { %v932_v26 = vpop.f32.mrf.mxu1 }
 0x450   : > { %v910_v35 = vpack.c.bf16 %v902_v32, %v902_v32  ;;  %v1611_v32 = vld [vmem:[#allocation7 + $0x8] sm:$0xff] }
 0x451   : > { %1269 = vmatpush.bf16.msrb.mxu1 %v1611_v32 }
 0x45e   : > { %v1040_v33 = vpop.permute.xlu1 %1039 }
 0x45f   : > { %v1045_v34 = vsel %vm917_vm9, %v1040_v33, 0  ;;  %vm1402_vm9 = vcmask 523264  }
 0x460   : > { %1054 = vmatpush.bf16.msrb.mxu3 %v1045_v34 }
 0x463   : > { %1569 = vmatmul.msk.bf16.vlgmr.msrb.gmra.mxu3 %vm628_vm8, %v910_v35  ;;  %v1610_v35 = vld [vmem:[#allocation7] sm:$0xff] }
 0x464   : > { %1149 = vmatpush.bf16.msra.mxu3 %v1140_v46  ;;  %1270 = vmatpush.bf16.msrb.mxu1 %v1610_v35 }
 0x474   : > { %v951_v36 = vpop.f32.mrf.mxu2 }
 0x475   : > { %v1086_v37 = vpack.c.bf16 %v951_v36, %v930_v25 }
 0x477   : > { %1571 = vmatmul.msk.bf16.vlgmr.msra.gmra.mxu1 %vm628_vm8, %v1086_v37 }
 0x478   : > { %v887_v38 = vpop.xlane.xlu2 %886 }
 0x479   : > { %1741 = vrcp.f32 %v887_v38 }
 0x47c   : > { %v953_v39 = vpop.f32.mrf.mxu2 }
 0x47f   : > { %v1742_v40 = vpop.eup %1741 }
 0x480   : > { %v903_v41 = vmul.f32 %v1742_v40, %v1730_v62 }
 0x482   : > { %v911_v42 = vpack.c.bf16 %v903_v41, %v903_v41 }
 0x484   : > { %1570 = vmatmul.msk.bf16.vlgmr.msra.gmra.mxu0 %vm628_vm8, %v911_v42 }
 0x4b4   : > { %v1014_v47 = vpop.f32.mrf.mxu1 }
 0x4b6   : > { %v972_v48 = vpop.f32.mrf.mxu3 }
 0x4b8   : > { %v993_v49 = vpop.f32.mrf.mxu0 }
 0x4b9   : > { %v1112_v50 = vpack.c.bf16 %v993_v49, %v972_v48 }
 0x4bb   : > { %1572 = vmatmul.msk.bf16.vlgmr.msra.gmra.mxu2 %vm628_vm8, %v1112_v50 }
 0x4bc   : > { %v1016_v51 = vpop.f32.mrf.mxu1 }
 0x4be   : > { %v974_v52 = vpop.f32.mrf.mxu3 }
 0x4c0   : > { %v995_v53 = vpop.f32.mrf.mxu0 }
 0x4c7   : > { %v1035_v54 = vpop.f32.mrf.mxu2 }
 0x4c8   : > { %v1135_v56 = vpack.c.bf16 %v1035_v54, %v1014_v47 }
 0x4ca   : > { %1573 = vmatmul.msk.bf16.vlgmr.msra.gmra.mxu3 %vm628_vm8, %v1135_v56  ;;  %v1702_v56 = vld [vmem:[%s2345_s8] ss:$0 sm:$0xff] }
 0x4cf   : > { %v1037_v13 = vpop.f32.mrf.mxu2 }
 0x4e6   : > { %v1056_v58 = vpop.f32.mrf.mxu3 }
 0x4ee   : > { %v1058_v29 = vpop.f32.mrf.mxu3 }
 0x4f4   : > { %v1102_v63 = vpop.f32.mrf.mxu1 }
 0x4f5   : > { %v1110_v4 = vadd.f32 %v1700_v8, %v1102_v63 }
 0x4fc   : > { %v1104_v6 = vpop.f32.mrf.mxu1 }
 0x4fd   : > { %v1111_v12 = vadd.f32 %v1700_v8, %v1104_v6 }
 0x501   : > { %v1077_v60 = vpop.f32.mrf.mxu0 }
 0x502   : > { %v1158_v61 = vpack.c.bf16 %v1077_v60, %v1056_v58 }
 0x504   : > { %1574 = vmatmul.msk.bf16.vlgmr.msrb.gmra.mxu0 %vm628_vm8, %v1158_v61  ;;  %v1703_v61 = vld [vmem:[%s2347_s10] ss:$0 sm:$0xff] }
 0x509   : > { %v1079_v62 = vpop.f32.mrf.mxu0 }
 0x53e   : > { %v1128_v1 = vpop.f32.mrf.mxu2 }
 0x53f   : > { %v1133_v18 = vadd.f32 %v1128_v1, %v1110_v4 }
 0x546   : > { %v1130_v9 = vpop.f32.mrf.mxu2 }
 0x547   : > { %v1134_v16 = vadd.f32 %v1130_v9, %v1111_v12 }
 0x54d   : > { %v1151_v3 = vpop.f32.mrf.mxu3 }
 0x54e   : > { %v1156_v5 = vadd.f32 %v1151_v3, %v1133_v18 }
 0x555   : > { %v1153_v15 = vpop.f32.mrf.mxu3 }
 0x556   : > { %v1157_v19 = vadd.f32 %v1153_v15, %v1134_v16 }
 0x581   : > { %v1174_v7 = vpop.f32.mrf.mxu0 }
 0x582   : > { %v1179_v11 = vadd.f32 %v1174_v7, %v1156_v5 }
 0x584   : > { %v2241_v14 = vadd.f32 %v1179_v11, %v2086_v0 }
 0x586   : > { %v1185_v17 = vsel %vm495_vm0, %v2241_v14, 0.0 }
 0x587   : > { %1186 = vadd.xlane.f32.xlu0 %v1185_v17 }
 0x589   : > { %v1176_v59 = vpop.f32.mrf.mxu0 }
 0x58a   : > { %v1180_v20 = vadd.f32 %v1176_v59, %v1157_v19 }
 0x58c   : > { %v2246_v21 = vadd.f32 %v1180_v20, %v2090_v2  ;;  %v1615_v20 = vld [vmem:[%s2348_s11 + $0x18] sm:$0xff] }
 0x58d   : > { %1410 = vmatpush.bf16.msrb.mxu2 %v1615_v20 }
 0x58e   : > { %v1188_v22 = vsel %vm495_vm0, %v2246_v21, 0.0 }
 0x58f   : > { %1189 = vadd.xlane.f32.xlu2 %v1188_v22 }
 0x5fa   : > { %v1187_v23 = vpop.xlane.xlu0 %1186 }
 0x5fb   : > { %v1191_v0 = vmul.f32 %v1187_v23, %v2094_v10 }
 0x5fd   : > { %v1193_v24 = vsub.f32 %v2241_v14, %v1191_v0 }
 0x5ff   : > { %v1195_v25 = vmul.f32 %v1193_v24, %v1193_v24 }
 0x601   : > { %v1197_v26 = vsel %vm495_vm0, %v1195_v25, 0.0 }
 0x602   : > { %1198 = vadd.xlane.f32.xlu2 %v1197_v26  ;;  %v1190_v27 = vpop.xlane.xlu2 %1189 }
 0x603   : > { %v1192_v28 = vmul.f32 %v1190_v27, %v2094_v10 }
 0x605   : > { %v1194_v30 = vsub.f32 %v2246_v21, %v1192_v28  ;;  %v1614_v28 = vld [vmem:[%s2348_s11 + $0x10] sm:$0xff] }
 0x606   : > { %1411 = vmatpush.bf16.msrb.mxu2 %v1614_v28 }
 0x607   : > { %v1196_v2 = vmul.f32 %v1194_v30, %v1194_v30 }
 0x609   : > { %v1200_v31 = vsel %vm495_vm0, %v1196_v2, 0.0 }
 0x60a   : > { %1201 = vadd.xlane.f32.xlu1 %v1200_v31 }
 0x675   : > { %v1199_v33 = vpop.xlane.xlu2 %1198 }
 0x676   : > { %v1203_v34 = vmul.f32 %v1199_v33, %v2094_v10 }
 0x678   : > { %v1205_v36 = vadd.f32 1e-05, %v1203_v34 }
 0x67a   : > { %1743 = vrsqrt.f32 %v1205_v36  ;;  %vm1213_vm11 = vweird.f32 %v1205_v36 }
 0x67d   : > { %v1202_v37 = vpop.xlane.xlu1 %1201 }
 0x67e   : > { %v1204_v38 = vmul.f32 %v1202_v37, %v2094_v10  ;;  %v1701_v10 = vld [vmem:[%s2344_s7] ss:$0 sm:$0xff] }
 0x680   : > { %v1744_v39 = vpop.eup %1743  ;;  %v1206_v40 = vadd.f32 1e-05, %v1204_v38 }
 0x681   : > { %v1208_v41 = vmul.f32 %v1744_v39, %v1205_v36  ;;  %vm1214_vm10 = vweird.f32 %v1744_v39  ;;  %v1613_v36 = vld [vmem:[%s2348_s11 + $0x8] sm:$0xff] }
 0x682   : > { %1745 = vrsqrt.f32 %v1206_v40  ;;  %vm1215_vm12 = vmor %vm1213_vm11, %vm1214_vm10  ;;  %vm1223_vm14 = vweird.f32 %v1206_v40  ;;  %1412 = vmatpush.bf16.msrb.mxu2 %v1613_v36 }
 0x683   : > { %v1209_v42 = vmul.f32 %v1744_v39, %v1208_v41 }
 0x685   : > { %v1210_v43 = vmul.f32 0.5, %v1209_v42  ;;  %v1612_v42 = vld [vmem:[%s2348_s11] sm:$0xff] }
 0x686   : > { %1413 = vmatpush.bf16.msrb.mxu2 %v1612_v42 }
 0x687   : > { %v1211_v44 = vsub.f32 1.5, %v1210_v43 }
 0x688   : > { %v1746_v45 = vpop.eup %1745 }
 0x689   : > { %v1212_v46 = vmul.f32 %v1744_v39, %v1211_v44  ;;  %v1218_v47 = vmul.f32 %v1746_v45, %v1206_v40  ;;  %vm1224_vm13 = vweird.f32 %v1746_v45 }
 0x68a   : > { %vm1225_vm15 = vmor %vm1223_vm14, %vm1224_vm13 }
 0x68b   : > { %v1219_v48 = vmul.f32 %v1746_v45, %v1218_v47  ;;  %v1216_v49 = vsel %vm1215_vm12, %v1744_v39, %v1212_v46 }
 0x68c   : > { %v1227_v52 = vmul.f32 %v1216_v49, %v1193_v24 }
 0x68d   : > { %v1220_v50 = vmul.f32 0.5, %v1219_v48 }
 0x68e   : > { %v1232_v13 = vmul.f32 %v1701_v10, %v1227_v52 }
 0x68f   : > { %v1221_v51 = vsub.f32 1.5, %v1220_v50 }
 0x690   : > { %v1237_v58 = vadd.f32 %v1702_v56, %v1232_v13 }
 0x691   : > { %v1222_v53 = vmul.f32 %v1746_v45, %v1221_v51 }
 0x693   : > { %v1226_v54 = vsel %vm1225_vm15, %v1746_v45, %v1222_v53 }
 0x694   : > { %v1228_v57 = vmul.f32 %v1226_v54, %v1194_v30 }
 0x696   : > { %v1233_v55 = vmul.f32 %v1701_v10, %v1228_v57 }
 0x698   : > { %v1238_v29 = vadd.f32 %v1702_v56, %v1233_v55 }
 0x69a   : > { %v1239_v60 = vpack.c.bf16 %v1238_v29, %v1237_v58 }
 0x69c   : > { %1583 = vmatmul.msk.bf16.vlgmr.msrb.gmra.mxu1 %vm495_vm0, %v1239_v60 }
 0x719   : > { %v1272_v62 = vpop.f32.mrf.mxu1 }
 0x71a   : > { %v2268_v63 = vadd.f32 %v1703_v61, %v1272_v62 }
 0x71c   : > { %v2271_v8 = vmul.f32 0.70710677, %v2268_v63 }
 0x71e   : > { %v1281_v1 = vmul.f32 %v2271_v8, %v2271_v8 }
 0x720   : > { %v1282_v3 = vmin.f32 %v1281_v1, 16.0 }
 0x721   : > { %v1274_v4 = vpop.f32.mrf.mxu1 }
 0x722   : > { %v1283_v18 = vmul.f32 2.1237322e-06, %v1282_v3  ;;  %v1294_v5 = vmul.f32 3.8918573e-05, %v1282_v3  ;;  %v2275_v6 = vadd.f32 %v1703_v61, %v1274_v4 }
 0x724   : > { %v1284_v7 = vadd.f32 0.00028619796, %v1283_v18  ;;  %v1295_v11 = vadd.f32 0.001143296, %v1294_v5  ;;  %v2278_v9 = vmul.f32 0.70710677, %v2275_v6 }
 0x726   : > { %v1296_v12 = vmul.f32 %v1295_v11, %v1282_v3  ;;  %v1321_v15 = vmul.f32 %v2278_v9, %v2278_v9  ;;  %v1285_v16 = vmul.f32 %v1284_v7, %v1282_v3 }
 0x728   : > { %v1297_v17 = vadd.f32 0.014752088, %v1296_v12  ;;  %v1322_v19 = vmin.f32 %v1321_v15, 16.0  ;;  %v1286_v0 = vadd.f32 0.0036580483, %v1285_v16 }
 0x72a   : > { %v1298_v59 = vmul.f32 %v1297_v17, %v1282_v3  ;;  %v1323_v22 = vmul.f32 2.1237322e-06, %v1322_v19  ;;  %v1334_v23 = vmul.f32 3.8918573e-05, %v1322_v19  ;;  %v1287_v31 = vmul.f32 %v1286_v0, %v1282_v3 }
 0x72c   : > { %v1299_v24 = vadd.f32 0.112945676, %v1298_v59  ;;  %v1324_v25 = vadd.f32 0.00028619796, %v1323_v22  ;;  %v1335_v26 = vadd.f32 0.001143296, %v1334_v23 }
 0x72d   : > { %v1288_v38 = vadd.f32 0.05243302, %v1287_v31 }
 0x72e   : > { %v1300_v27 = vmul.f32 %v1299_v24, %v1282_v3  ;;  %v1325_v30 = vmul.f32 %v1324_v25, %v1322_v19  ;;  %v1336_v2 = vmul.f32 %v1335_v26, %v1322_v19  ;;  %v1277_v24 = vmul.f32 0.5, %v2268_v63 }
 0x72f   : > { %v1289_v44 = vmul.f32 %v1288_v38, %v1282_v3  ;;  %v1278_v25 = vmul.f32 0.5, %v2275_v6 }
 0x730   : > { %v1301_v32 = vadd.f32 0.4994258, %v1300_v27  ;;  %v1326_v33 = vadd.f32 0.0036580483, %v1325_v30  ;;  %v1337_v34 = vadd.f32 0.014752088, %v1336_v2 }
 0x731   : > { %v1290_v49 = vadd.f32 0.18741608, %v1289_v44 }
 0x732   : > { %v1302_v35 = vmul.f32 %v1301_v32, %v1282_v3  ;;  %v1338_v37 = vmul.f32 %v1337_v34, %v1322_v19  ;;  %v1327_v40 = vmul.f32 %v1326_v33, %v1322_v19 }
 0x733   : > { %v1291_v53 = vmul.f32 %v1290_v49, %v1282_v3 }
 0x734   : > { %v1303_v39 = vadd.f32 1.0, %v1302_v35  ;;  %v1339_v41 = vadd.f32 0.112945676, %v1338_v37  ;;  %v1328_v45 = vadd.f32 0.05243302, %v1327_v40 }
 0x735   : > { %v1292_v58 = vadd.f32 1.1283791, %v1291_v53 }
 0x736   : > { %1747 = vrcp.f32 %v1303_v39  ;;  %v1340_v43 = vmul.f32 %v1339_v41, %v1322_v19  ;;  %v1329_v51 = vmul.f32 %v1328_v45, %v1322_v19  ;;  %v1315_v56 = vand.u32 2147483648, %v1303_v39 }
 0x737   : > { %v1313_v57 = vand.u32 2147483647, %v1303_v39  ;;  %vm1309_vm2 = vweird.f32 %v1303_v39  ;;  %v1293_v18 = vmul.f32 %v1292_v58, %v2271_v8 }
 0x738   : > { %v1341_v46 = vadd.f32 0.4994258, %v1340_v43  ;;  %v1330_v13 = vadd.f32 0.18741608, %v1329_v51  ;;  %v1316_v61 = vor.u32 1.1754944e-38, %v1315_v56 }
 0x739   : > { %vm1314_vm4 = vcmp.eq.f32.partialorder %v1313_v57, 8.507059e+37 }
 0x73a   : > { %v1342_v47 = vmul.f32 %v1341_v46, %v1322_v19  ;;  %v1331_v62 = vmul.f32 %v1330_v13, %v1322_v19 }
 0x73c   : > { %v1748_v48 = vpop.eup %1747  ;;  %v1343_v10 = vadd.f32 1.0, %v1342_v47  ;;  %v1332_v3 = vadd.f32 1.1283791, %v1331_v62 }
 0x73d   : > { %v1305_v50 = vmul.f32 %v1748_v48, %v1303_v39  ;;  %vm1310_vm1 = vweird.f32 %v1748_v48 }
 0x73e   : > { %1749 = vrcp.f32 %v1343_v10  ;;  %vm1311_vm3 = vmor %vm1309_vm2, %vm1310_vm1  ;;  %v1355_v7 = vand.u32 2147483648, %v1343_v10  ;;  %v1353_v15 = vand.u32 2147483647, %v1343_v10  ;;  %vm1349_vm6 = vweird.f32 %v1343_v10 }
 0x73f   : > { %v1306_v52 = vsub.f32 1.0, %v1305_v50  ;;  %v1333_v19 = vmul.f32 %v1332_v3, %v2278_v9  ;;  %v1704_v9 = vld [vmem:[%s2349_s12] ss:$0 sm:$0xff] }
 0x740   : > { %v1356_v17 = vor.u32 1.1754944e-38, %v1355_v7  ;;  %vm1354_vm8 = vcmp.eq.f32.partialorder %v1353_v15, 8.507059e+37 }
 0x741   : > { %v1307_v54 = vmul.f32 %v1748_v48, %v1306_v52 }
 0x743   : > { %v1308_v55 = vadd.f32 %v1748_v48, %v1307_v54 }
 0x744   : > { %v1750_v29 = vpop.eup %1749 }
 0x745   : > { %v1312_v60 = vsel %vm1311_vm3, %v1748_v48, %v1308_v55  ;;  %v1345_v1 = vmul.f32 %v1750_v29, %v1343_v10  ;;  %vm1350_vm5 = vweird.f32 %v1750_v29 }
 0x746   : > { %v1317_v4 = vsel %vm1314_vm4, %v1316_v61, %v1312_v60  ;;  %vm1351_vm7 = vmor %vm1349_vm6, %vm1350_vm5 }
 0x747   : > { %v1346_v5 = vsub.f32 1.0, %v1345_v1  ;;  %v1318_v11 = vmul.f32 %v1317_v4, %v1293_v18 }
 0x749   : > { %v1347_v12 = vmul.f32 %v1750_v29, %v1346_v5  ;;  %v1584_v59 = vclamps-f32 %v1318_v11, 1.0 }
 0x74b   : > { %v1348_v16 = vadd.f32 %v1750_v29, %v1347_v12  ;;  %v1361_v8 = vadd.f32 1.0, %v1584_v59 }
 0x74d   : > { %v1352_v20 = vsel %vm1351_vm7, %v1750_v29, %v1348_v16  ;;  %v1363_v27 = vmul.f32 %v1361_v8, %v1277_v24 }
 0x74e   : > { %v1357_v22 = vsel %vm1354_vm8, %v1356_v17, %v1352_v20 }
 0x74f   : > { %v1358_v23 = vmul.f32 %v1357_v22, %v1333_v19 }
 0x751   : > { %v1585_v0 = vclamps-f32 %v1358_v23, 1.0 }
 0x753   : > { %v1362_v26 = vadd.f32 1.0, %v1585_v0 }
 0x755   : > { %v1364_v28 = vmul.f32 %v1362_v26, %v1278_v25 }
 0x757   : > { %v1365_v30 = vpack.c.bf16 %v1364_v28, %v1363_v27 }
 0x759   : > { %1602 = vmatmul.msk.bf16.vlgmr.msrb.gmra.mxu2 %vm1402_vm9, %v1365_v30 }
 0x7dc   : > { %v1415_v2 = vpop.f32.mrf.mxu2 }
 0x7dd   : > { %v1416_v31 = vadd.f32 %v1704_v9, %v1415_v2 }
 0x7df   : > { %v1420_v32 = vadd.f32 %v1416_v31, %v2241_v14 }
 0x7e1   : > { %1422 = vst.msk [vmem:[%s482_s27] sm:$0xff] %vm495_vm0, %v1420_v32 }
 0x7e4   : > { %v1417_v63 = vpop.f32.mrf.mxu2 }
 0x7e5   : > { %v1418_v6 = vadd.f32 %v1704_v9, %v1417_v63 }
 0x7e7   : > { %v1421_v33 = vadd.f32 %v1418_v6, %v2246_v21 }
 0x7e9   : > { %1423 = vst.msk [vmem:[%s482_s27 + $0x8] sm:$0xff] %vm495_vm0, %v1421_v33 }
 0x7ea   : > { %1868 = shalt.err (!%p1865_p8)
}
 0x7eb   : > { %s1924_s23 = smov 128   ;;  %s1925_s24 = smov 8  }
 0x7ec   : > { %1629 = dma.vmem_to_hbm [thread:$0]  (%p2034_p5), %s1438_s5, 256, %s1440_s25, %s1425_s29, %s1924_s23, %s1924_s23, %s1925_s24  }
 0x7ed PF: > { %s2367_s17 = sld [smem:[#allocation12_spill]]  ;;  %p1651_p9 = scmp.ge.s32.totalorder %s1911_s28, 2 }
 0x7ef   : > { %p1642_p10 = pnand %p1651_p9, %p2038_p6 }
 0x7f1   : > { %p1643_p11 = pneg %p1642_p10 }
 0x7f3   : > { %s1454_s27 = sand.u32 1, %s2367_s17  }
 0x7f4   : > { %s1455_s20 = scalar_lea.sflag [#allocation4], %s1454_s27 }
 0x7f5   : > { %1894 = dma.done.wait (%p1643_p11), %s1455_s20, 256  }
 0x7f6   : > { %1896 = vsyncadd (%p1643_p11), %s1455_s20, 4294967040  ;;  %s2369_s28 = sld [smem:[#allocation14_spill]]  ;;  %s2372_s25 = smov %s1903_s26 }
 0x7f7   : > { %s2370_s14 = sld [smem:[#allocation13_spill]] }
 0x7f8   : > { %s2371_s27 = sld [smem:[#allocation15_spill]] }
 0x7fc   : > { %p25_p12 = scmp.ge.s32.totalorder %s2369_s28, 4  }
 0x7fd   : > { %s2373_s26 = smov %s2370_s14 }
 0x7fe   :  { %27 = sbr.rel (!%p25_p12) target bundleno = 7 (0x7), region = 120 }
 0x803   :  { %1461 = vsyncpa [#allocation3], 1 }
 0x804   :  { %1463 = vsyncpa [#allocation3 + $0x1], 1 }
 0x805   :  { %1464 = vsyncpa [#allocation6], 1 }
 0x806   :  { %1465 = vsyncpa [#allocation4], 1 }
 0x807   :  { %1467 = vsyncpa [#allocation4 + $0x1], 1 }

</bundles_post_ra>
